<compile_context>
chip_gen: v7x
topology: tpu7x:2x2x1
jax: 0.10.0
libtpu: 0.0.40
codegen_flags: <defaults>
</compile_context>

<pallas_src>
import jax
import jax.numpy as jnp
from jax.experimental import pallas as pl
from jax.experimental.pallas import tpu as pltpu

IN_F = 28 * 28       # 784 — kept unpadded (MXU K tiling is the same as 896)
HID = 512
OUT_F = 10
OUT_PAD = 128        # lane-dense output head
NEG_BIAS = -1e30     # padded logit lanes -> exp() == 0 in the softmax denominator
TB_MAX = 512         # max batch tile (amortizes per-step overhead, fits VMEM)


def mlp_kernel(x_ref, w1_ref, b1_ref, w2_ref, b2_ref, w3_ref, b3_ref, o_ref):
    # f32 -> bf16 cast in-kernel (hides under the MXU); f32 accumulation.
    x = x_ref[...].astype(jnp.bfloat16)
    h1 = jnp.dot(x, w1_ref[...], preferred_element_type=jnp.float32) + b1_ref[...]
    h1 = jnp.maximum(h1, 0.0)
    h2 = jnp.dot(h1.astype(jnp.bfloat16), w2_ref[...],
                 preferred_element_type=jnp.float32) + b2_ref[...]
    h2 = jnp.maximum(h2, 0.0)
    # output head padded to 128 lanes; padded lanes carry a ~-1e30 bias
    logits = jnp.dot(h2.astype(jnp.bfloat16), w3_ref[...],
                     preferred_element_type=jnp.float32) + b3_ref[...]
    # log_softmax along lanes; padded lanes don't affect the max (real logits
    # dominate -1e30) and contribute exp()==0 to the sum. All f32 on the VPU/EUP.
    m = jnp.max(logits, axis=-1, keepdims=True)
    shifted = logits - m
    lse = jnp.log(jnp.sum(jnp.exp(shifted), axis=-1, keepdims=True))
    o_ref[...] = shifted - lse


def prepare_params(params):
    """Pad + cast params for the kernel. Call ONCE, outside the hot path."""
    w1, b1, w2, b2, w3, b3 = params
    w3p = jnp.zeros((HID, OUT_PAD), jnp.float32).at[:, :OUT_F].set(w3).astype(jnp.bfloat16)
    b3p = jnp.full((1, OUT_PAD), NEG_BIAS, jnp.float32).at[:, :OUT_F].set(
        jnp.asarray(b3, jnp.float32).reshape(1, OUT_F))
    return (w1.astype(jnp.bfloat16), jnp.asarray(b1, jnp.float32).reshape(1, HID),
            w2.astype(jnp.bfloat16), jnp.asarray(b2, jnp.float32).reshape(1, HID),
            w3p, b3p)


def _round_up(n, m):
    return ((n + m - 1) // m) * m


def _select_tb(batch):
    """Large tiles to amortize per-step overhead, but keep grid >= 2 for v7x's
    two TensorCores when the batch allows it."""
    if batch < 16:
        # one block whose dims equal the full array dims (always legal)
        return batch
    tb = _round_up(pl.cdiv(batch, 2), 8)   # second-last block dim must be %8
    return min(TB_MAX, tb)


def mnist_lr_net_forward(x, prep_params):
    """x: (B, 1, 28, 28) or (B, 784). prep_params from prepare_params().
    Returns (B, 10) f32 log-probs."""
    w1p, b1, w2p, b2, w3p, b3p = prep_params
    x2d = x.reshape(-1, IN_F).astype(jnp.float32)
    B = x2d.shape[0]
    tb = _select_tb(B)
    grid = (pl.cdiv(B, tb),)   # trailing partial block clipped by Pallas

    const = lambda shape: pl.BlockSpec(shape, lambda i: (0, 0))
    out = pl.pallas_call(
        mlp_kernel,
        out_shape=jax.ShapeDtypeStruct((B, OUT_PAD), jnp.float32),
        grid=grid,
        in_specs=[
            # activations: streamed (double-buffered) over the batch grid;
            # last block dim == full array dim (784), so no lane padding needed
            pl.BlockSpec((tb, IN_F), lambda i: (i, 0)),
            # weights / biases: constant index_map -> fetched once, VMEM-resident
            const((IN_F, HID)), const((1, HID)),
            const((HID, HID)), const((1, HID)),
            const((HID, OUT_PAD)), const((1, OUT_PAD)),
        ],
        out_specs=pl.BlockSpec((tb, OUT_PAD), lambda i: (i, 0)),
        compiler_params=pltpu.CompilerParams(
            dimension_semantics=("parallel",),   # v7x: 2 TCs split the batch grid
            vmem_limit_bytes=32 << 20,           # real footprint ~10 MiB at tb=512
        ),
    )(x2d, w1p, b1, w2p, b2, w3p, b3p)
    # TODO(synk): a fused consumer could read the first 10 lanes of the padded
    # (B, 128) output directly and skip this (cheap, lane-only) slice.
    return out[:, :OUT_F]


def init_params(key):
    """Deterministic PyTorch-Linear-style init (uniform +/- 1/sqrt(fan_in))."""
    def linear(key, fan_in, fan_out):
        kw, kb = jax.random.split(key)
        bound = 1.0 / (fan_in ** 0.5)
        # stored as (in, out) — transposed vs PyTorch's (out, in)
        w = jax.random.uniform(kw, (fan_in, fan_out), jnp.float32, -bound, bound)
        b = jax.random.uniform(kb, (1, fan_out), jnp.float32, -bound, bound)
        return w, b

    k1, k2, k3 = jax.random.split(key, 3)
    w1, b1 = linear(k1, IN_F, HID)
    w2, b2 = linear(k2, HID, HID)
    w3, b3 = linear(k3, HID, OUT_F)
    return (w1, b1, w2, b2, w3, b3)


def reference_forward(x, params):
    """Pure-JAX reference with the same bf16-matmul / f32-accumulate recipe."""
    w1, b1, w2, b2, w3, b3 = params
    h = x.reshape(-1, IN_F).astype(jnp.float32)
    h1 = jnp.maximum(
        jnp.dot(h.astype(jnp.bfloat16), w1.astype(jnp.bfloat16),
                preferred_element_type=jnp.float32) + b1, 0.0)
    h2 = jnp.maximum(
        jnp.dot(h1.astype(jnp.bfloat16), w2.astype(jnp.bfloat16),
                preferred_element_type=jnp.float32) + b2, 0.0)
    logits = jnp.dot(h2.astype(jnp.bfloat16), w3.astype(jnp.bfloat16),
                     preferred_element_type=jnp.float32) + b3
    return jax.nn.log_softmax(logits, axis=1)


if __name__ == "__main__":
    key = jax.random.PRNGKey(0)
    kx, kp = jax.random.split(key)

    params = init_params(kp)
    prep = prepare_params(params)          # once, outside the hot path
    fwd = jax.jit(mnist_lr_net_forward)    # pad/cast/slice fold into the jit

    # small batch of MNIST-shaped NCHW inputs
    x = jax.random.normal(kx, (2, 1, 28, 28), jnp.float32)
    out = jax.block_until_ready(fwd(x, prep))
    ref = reference_forward(x, params)
    assert out.shape == (2, OUT_F)
    assert jnp.allclose(out, ref, atol=1e-2, rtol=1e-2), "mismatch vs reference (B=2)"

    # second shape: exercises grid >= 2 and the clipped trailing partial block
    x2 = jax.random.normal(kx, (100, 1, 28, 28), jnp.float32)
    out2 = jax.block_until_ready(fwd(x2, prep))
    ref2 = reference_forward(x2, params)
    assert out2.shape == (100, OUT_F)
    assert jnp.allclose(out2, ref2, atol=1e-2, rtol=1e-2), "mismatch vs reference (B=100)"

    print("KERNEL_OK")
</pallas_src>

<mosaic_0001>
module attributes {stable_mosaic.version = 11 : i64} {
  func.func @mlp_kernel(%arg0: i32, %arg1: memref<2x784xf32, #tpu.memory_space<vmem>>, %arg2: memref<784x512xbf16, #tpu.memory_space<vmem>>, %arg3: memref<1x512xf32, #tpu.memory_space<vmem>>, %arg4: memref<512x512xbf16, #tpu.memory_space<vmem>>, %arg5: memref<1x512xf32, #tpu.memory_space<vmem>>, %arg6: memref<512x128xbf16, #tpu.memory_space<vmem>>, %arg7: memref<1x128xf32, #tpu.memory_space<vmem>>, %arg8: memref<2x128xf32, #tpu.memory_space<vmem>>) attributes {dimension_semantics = [#tpu.dimension_semantics<parallel>], iteration_bounds = array<i64: 1>, scalar_prefetch = 0 : i64, scratch_operands = 0 : i64, tpu.core_type = #tpu.core_type<tc>, window_params = [{transform_indices = @transform_0, window_bounds = array<i64: 2, 784>}, {pipeline_mode = #tpu.pipeline_mode<synchronous>, transform_indices = @transform_1, window_bounds = array<i64: 784, 512>}, {pipeline_mode = #tpu.pipeline_mode<synchronous>, transform_indices = @transform_2, window_bounds = array<i64: 1, 512>}, {pipeline_mode = #tpu.pipeline_mode<synchronous>, transform_indices = @transform_3, window_bounds = array<i64: 512, 512>}, {pipeline_mode = #tpu.pipeline_mode<synchronous>, transform_indices = @transform_4, window_bounds = array<i64: 1, 512>}, {pipeline_mode = #tpu.pipeline_mode<synchronous>, transform_indices = @transform_5, window_bounds = array<i64: 512, 128>}, {pipeline_mode = #tpu.pipeline_mode<synchronous>, transform_indices = @transform_6, window_bounds = array<i64: 1, 128>}, {transform_indices = @transform_7, window_bounds = array<i64: 2, 128>}]} {
    %c0 = arith.constant 0 : index
    %c0_0 = arith.constant 0 : index
    %0 = vector.load %arg1[%c0, %c0_0] : memref<2x784xf32, #tpu.memory_space<vmem>>, vector<2x784xf32>
    %1 = arith.truncf %0 : vector<2x784xf32> to vector<2x784xbf16>
    %c0_1 = arith.constant 0 : index
    %c0_2 = arith.constant 0 : index
    %2 = vector.load %arg2[%c0_1, %c0_2] : memref<784x512xbf16, #tpu.memory_space<vmem>>, vector<784x512xbf16>
    %cst = arith.constant dense<0.000000e+00> : vector<2x512xf32>
    %3 = tpu.matmul %1, %2, %cst {dimension_numbers = #tpu.dot_dimension_numbers<[1], [0], [0], [1], [0, 0, 1, 1], [], []>} : vector<2x784xbf16>, vector<784x512xbf16>, vector<2x512xf32> -> vector<2x512xf32>
    %c0_3 = arith.constant 0 : index
    %c0_4 = arith.constant 0 : index
    %4 = vector.load %arg3[%c0_3, %c0_4] : memref<1x512xf32, #tpu.memory_space<vmem>>, vector<1x512xf32>
    %5 = vector.broadcast %4 : vector<1x512xf32> to vector<2x512xf32>
    %6 = arith.addf %3, %5 : vector<2x512xf32>
    %cst_5 = arith.constant 0.000000e+00 : f32
    %7 = vector.broadcast %cst_5 : f32 to vector<2x512xf32>
    %8 = arith.maximumf %6, %7 : vector<2x512xf32>
    %9 = arith.truncf %8 : vector<2x512xf32> to vector<2x512xbf16>
    %c0_6 = arith.constant 0 : index
    %c0_7 = arith.constant 0 : index
    %10 = vector.load %arg4[%c0_6, %c0_7] : memref<512x512xbf16, #tpu.memory_space<vmem>>, vector<512x512xbf16>
    %cst_8 = arith.constant dense<0.000000e+00> : vector<2x512xf32>
    %11 = tpu.matmul %9, %10, %cst_8 {dimension_numbers = #tpu.dot_dimension_numbers<[1], [0], [0], [1], [0, 0, 1, 1], [], []>} : vector<2x512xbf16>, vector<512x512xbf16>, vector<2x512xf32> -> vector<2x512xf32>
    %c0_9 = arith.constant 0 : index
    %c0_10 = arith.constant 0 : index
    %12 = vector.load %arg5[%c0_9, %c0_10] : memref<1x512xf32, #tpu.memory_space<vmem>>, vector<1x512xf32>
    %13 = vector.broadcast %12 : vector<1x512xf32> to vector<2x512xf32>
    %14 = arith.addf %11, %13 : vector<2x512xf32>
    %cst_11 = arith.constant 0.000000e+00 : f32
    %15 = vector.broadcast %cst_11 : f32 to vector<2x512xf32>
    %16 = arith.maximumf %14, %15 : vector<2x512xf32>
    %17 = arith.truncf %16 : vector<2x512xf32> to vector<2x512xbf16>
    %c0_12 = arith.constant 0 : index
    %c0_13 = arith.constant 0 : index
    %18 = vector.load %arg6[%c0_12, %c0_13] : memref<512x128xbf16, #tpu.memory_space<vmem>>, vector<512x128xbf16>
    %cst_14 = arith.constant dense<0.000000e+00> : vector<2x128xf32>
    %19 = tpu.matmul %17, %18, %cst_14 {dimension_numbers = #tpu.dot_dimension_numbers<[1], [0], [0], [1], [0, 0, 1, 1], [], []>} : vector<2x512xbf16>, vector<512x128xbf16>, vector<2x128xf32> -> vector<2x128xf32>
    %c0_15 = arith.constant 0 : index
    %c0_16 = arith.constant 0 : index
    %20 = vector.load %arg7[%c0_15, %c0_16] : memref<1x128xf32, #tpu.memory_space<vmem>>, vector<1x128xf32>
    %21 = vector.broadcast %20 : vector<1x128xf32> to vector<2x128xf32>
    %22 = arith.addf %19, %21 : vector<2x128xf32>
    %cst_17 = arith.constant dense<0xFF800000> : vector<2xf32>
    %23 = vector.multi_reduction <maximumf>, %22, %cst_17 [1] : vector<2x128xf32> to vector<2xf32>
    %24 = vector.shape_cast %23 : vector<2xf32> to vector<2x1xf32>
    %25 = vector.broadcast %24 : vector<2x1xf32> to vector<2x128xf32>
    %26 = arith.subf %22, %25 : vector<2x128xf32>
    %27 = math.exp %26 : vector<2x128xf32>
    %cst_18 = arith.constant dense<0.000000e+00> : vector<2xf32>
    %28 = vector.multi_reduction <add>, %27, %cst_18 [1] : vector<2x128xf32> to vector<2xf32>
    %29 = vector.shape_cast %28 : vector<2xf32> to vector<2x1xf32>
    %30 = math.log %29 : vector<2x1xf32>
    %31 = vector.broadcast %30 : vector<2x1xf32> to vector<2x128xf32>
    %32 = arith.subf %26, %31 : vector<2x128xf32>
    %c0_19 = arith.constant 0 : index
    %c0_20 = arith.constant 0 : index
    %33 = vector.load %arg8[%c0_19, %c0_20] : memref<2x128xf32, #tpu.memory_space<vmem>>, vector<2x128xf32>
    tpu.vector_store %arg8[%c0_19, %c0_20], %32 {strides = array<i32>} : memref<2x128xf32, #tpu.memory_space<vmem>>, vector<2x128xf32>,
    return
  }
  func.func @transform_0(%arg0: i32) -> (i32, i32) {
    %c0_i32 = arith.constant 0 : i32
    %c0_i32_0 = arith.constant 0 : i32
    return %arg0, %c0_i32 : i32, i32
  }
  func.func @transform_1(%arg0: i32) -> (i32, i32) {
    %c0_i32 = arith.constant 0 : i32
    %c0_i32_0 = arith.constant 0 : i32
    %c0_i32_1 = arith.constant 0 : i32
    return %c0_i32, %c0_i32_0 : i32, i32
  }
  func.func @transform_2(%arg0: i32) -> (i32, i32) {
    %c0_i32 = arith.constant 0 : i32
    %c0_i32_0 = arith.constant 0 : i32
    %c0_i32_1 = arith.constant 0 : i32
    return %c0_i32, %c0_i32_0 : i32, i32
  }
  func.func @transform_3(%arg0: i32) -> (i32, i32) {
    %c0_i32 = arith.constant 0 : i32
    %c0_i32_0 = arith.constant 0 : i32
    %c0_i32_1 = arith.constant 0 : i32
    return %c0_i32, %c0_i32_0 : i32, i32
  }
  func.func @transform_4(%arg0: i32) -> (i32, i32) {
    %c0_i32 = arith.constant 0 : i32
    %c0_i32_0 = arith.constant 0 : i32
    %c0_i32_1 = arith.constant 0 : i32
    return %c0_i32, %c0_i32_0 : i32, i32
  }
  func.func @transform_5(%arg0: i32) -> (i32, i32) {
    %c0_i32 = arith.constant 0 : i32
    %c0_i32_0 = arith.constant 0 : i32
    %c0_i32_1 = arith.constant 0 : i32
    return %c0_i32, %c0_i32_0 : i32, i32
  }
  func.func @transform_6(%arg0: i32) -> (i32, i32) {
    %c0_i32 = arith.constant 0 : i32
    %c0_i32_0 = arith.constant 0 : i32
    %c0_i32_1 = arith.constant 0 : i32
    return %c0_i32, %c0_i32_0 : i32, i32
  }
  func.func @transform_7(%arg0: i32) -> (i32, i32) {
    %c0_i32 = arith.constant 0 : i32
    %c0_i32_0 = arith.constant 0 : i32
    return %arg0, %c0_i32 : i32, i32
  }
}

</mosaic_0001>

<bundles_post_ra>
// kernel: mnist_lr_net_forward.1
= control target key start
LH: loop header
LB: loop body
LE: loop exit
PB: predicated region body
PF: predicated region fallthrough
CT: control target
= control target key end

     0   :  { %12 = vsyncpa [#allocation3], 0  ;;  %s4239_s0 = inlined_call_operand.vmem [shape: f32[2,784], index: 0, kind: input, shape index: {}]   ;;  %s4240_s1 = inlined_call_operand.hbm [shape: bf16[784,512], index: 1, kind: input, shape index: {}]   ;;  %s4241_s2 = inlined_call_operand.vmem [shape: f32[1,512], index: 2, kind: input, shape index: {}]   ;;  %s4242_s3 = inlined_call_operand.hbm [shape: bf16[512,512], index: 3, kind: input, shape index: {}]   ;;  %s4243_s4 = inlined_call_operand.vmem [shape: f32[1,512], index: 4, kind: input, shape index: {}]   ;;  %s4244_s5 = inlined_call_operand.hbm [shape: bf16[512,128], index: 5, kind: input, shape index: {}]   ;;  %s4245_s6 = inlined_call_operand.vmem [shape: f32[1,128], index: 6, kind: input, shape index: {}]   ;;  %s4246_s7 = inlined_call_operand.hbm [shape: f32[2,128], index: 7, kind: output, shape index: {}]  }
   0x1   :  { %13 = vsyncpa [#allocation6], 0 }
   0x2   :  { %14 = vsyncpa [#allocation4], 0  ;;  %s4064_s24 = smov [#allocation5]   ;;  %s4065_s26 = smov [#allocation2]  }
   0x3   :  { %s36_s25 = sshll.u32 %s4064_s24, 4  ;;  %s22_s27 = sshll.u32 %s4065_s26, 4  ;;  %s37_s25 = int_to_ptr.vmem [resolvable:$true] %s36_s25  ;;  %s4114_s27 = int_to_ptr.vmem [resolvable:$true] %s22_s27 }
   0x4   :  { %s3970_s30 = scalar_lea.hbm %s4242_s3, 16384 }
   0x5   :  { %p3971_p0 = scmp.ne.s32.totalorder %s4242_s3, %s3970_s30  ;;  %p3974_p1 = scmp.lt.u32.totalorder %s3970_s30, %s4242_s3 }
   0x7   :  { %p3976_p2 = pnand %p3974_p1, %p3971_p0 }
   0x9   :  { %3979 = shalt.err (!%p3976_p2)
}
   0xa   :  { %s3980_s12 = scalar_lea.vmem %s37_s25, 16384  ;;  %p3985_p4 = scmp.lt.s32.totalorder %s37_s25, %s37_s25 }
   0xb   :  { %p3981_p3 = scmp.ne.s32.totalorder %s37_s25, %s3980_s12  ;;  %p3986_p5 = scmp.lt.s32.totalorder %s3980_s12, %s3980_s12 }
   0xd   :  { %p3987_p6 = por %p3986_p5, %p3985_p4 }
   0xf   :  { %p3988_p7 = pnand %p3987_p6, %p3981_p3 }
  0x11   :  { %3991 = shalt.err (!%p3988_p7)
}
  0x12   :  { %s4066_s13 = smov 256   ;;  %s4067_s14 = smov 16  }
  0x13   :  { %42 = dma.hbm_to_vmem [thread:$0]  %s4242_s3, 16384, %s37_s25, [#allocation6], %s4066_s13, %s4066_s13, %s4067_s14  }
  0x14   :  { %s3992_s19 = scalar_lea.hbm %s4240_s1, 25088 }
  0x15   :  { %p3993_p8 = scmp.ne.s32.totalorder %s4240_s1, %s3992_s19  ;;  %p3996_p9 = scmp.lt.u32.totalorder %s3992_s19, %s4240_s1 }
  0x17   :  { %p3998_p10 = pnand %p3996_p9, %p3993_p8 }
  0x19   :  { %4001 = shalt.err (!%p3998_p10)
}
  0x1a   :  { %s4002_s24 = scalar_lea.vmem %s4114_s27, 25088  ;;  %p4007_p12 = scmp.lt.s32.totalorder %s4114_s27, %s4114_s27 }
  0x1b   :  { %p4003_p11 = scmp.ne.s32.totalorder %s4114_s27, %s4002_s24  ;;  %p4008_p13 = scmp.lt.s32.totalorder %s4002_s24, %s4002_s24 }
  0x1d   :  { %p4009_p0 = por %p4008_p13, %p4007_p12 }
  0x1f   :  { %p4010_p1 = pnand %p4009_p0, %p4003_p11 }
  0x21   :  { %4013 = shalt.err (!%p4010_p1)
}
  0x22   :  { %28 = dma.hbm_to_vmem [thread:$0]  %s4240_s1, 25088, %s4114_s27, [#allocation3], %s4066_s13, %s4066_s13, %s4067_s14  }
  0x23   :  { %s4068_s26 = smov [#allocation7]   ;;  %s4014_s8 = scalar_lea.hbm %s4244_s5, 4096 }
  0x24   :  { %s50_s28 = sshll.u32 %s4068_s26, 4  ;;  %p4015_p2 = scmp.ne.s32.totalorder %s4244_s5, %s4014_s8  ;;  %s51_s28 = int_to_ptr.vmem [resolvable:$true] %s50_s28 }
  0x25   :  { %p4018_p3 = scmp.lt.u32.totalorder %s4014_s8, %s4244_s5 }
  0x27   :  { %p4020_p4 = pnand %p4018_p3, %p4015_p2 }
  0x29   :  { %4023 = shalt.err (!%p4020_p4)
}
  0x2a   :  { %s4024_s15 = scalar_lea.vmem %s51_s28, 4096  ;;  %p4029_p6 = scmp.lt.s32.totalorder %s51_s28, %s51_s28 }
  0x2b   :  { %p4025_p5 = scmp.ne.s32.totalorder %s51_s28, %s4024_s15  ;;  %p4030_p7 = scmp.lt.s32.totalorder %s4024_s15, %s4024_s15 }
  0x2d   :  { %p4031_p8 = por %p4030_p7, %p4029_p6 }
  0x2f   :  { %p4032_p9 = pnand %p4031_p8, %p4025_p5 }
  0x31   :  { %4035 = shalt.err (!%p4032_p9)
}
  0x32   :  { %s4069_s1 = smov 64   ;;  %s4070_s27 = smov 4  }
  0x33   :  { %56 = dma.hbm_to_vmem [thread:$0]  %s4244_s5, 4096, %s51_s28, [#allocation6], %s4069_s1, %s4069_s1, %s4070_s27  }
  0x34   :  { %4058 = dma.done.wait [#allocation3], 25088  }
  0x35   :  { %4059 = vsyncadd [#allocation3], 4294942208 }
  0x36   :  { %4060 = dma.done.wait [#allocation6], 20480  }
  0x37   :  { %4061 = vsyncadd [#allocation6], 4294946816  ;;  %v3446_v0 = vld [vmem:[#allocation2 + $0x4] ss:$16 sps:$4 sm:$0xff]   ;;  %v3448_v1 = vld [vmem:[#allocation2 + $0xc] ss:$16 sps:$4 sm:$0xff]   ;;  %v77_v38 = vlaneseq }
  0x38   :  { %1322 = vmatprep.subr.bf16.mxu0 %v3446_v0  ;;  %v3450_v2 = vld [vmem:[#allocation2] ss:$16 sps:$4 sm:$0xff]   ;;  %v3451_v3 = vld [vmem:[#allocation2 + $0x8] ss:$16 sps:$4 sm:$0xff]   ;;  %1486 = vmatprep.subr.bf16.mxu1 %v3448_v1  ;;  %v3452_v4 = vld [vmem:[#allocation2 + $0x24] ss:$16 sps:$4 sm:$0xff]  }
  0x39   :  { %1323 = vmatpush1.bf16.msra.mxu0 %v3450_v2  ;;  %1487 = vmatpush1.bf16.msra.mxu1 %v3451_v3  ;;  %v3454_v5 = vld [vmem:[#allocation2 + $0x2c] ss:$16 sps:$4 sm:$0xff]   ;;  %v3456_v6 = vld [vmem:[#allocation2 + $0x20] ss:$16 sps:$4 sm:$0xff]   ;;  %v3457_v7 = vld [vmem:[#allocation2 + $0x28] ss:$16 sps:$4 sm:$0xff]  }
  0x3a   :  { %1324 = vmatprep.subr.bf16.mxu0 %v3452_v4  ;;  %1488 = vmatprep.subr.bf16.mxu1 %v3454_v5  ;;  %v3458_v8 = vld [vmem:[#allocation2 + $0x44] ss:$16 sps:$4 sm:$0xff]   ;;  %v3460_v9 = vld [vmem:[#allocation2 + $0x4c] ss:$16 sps:$4 sm:$0xff]   ;;  %v3462_v10 = vld [vmem:[#allocation2 + $0x40] ss:$16 sps:$4 sm:$0xff]  }
  0x3b   :  { %v3463_v11 = vld [vmem:[#allocation2 + $0x48] ss:$16 sps:$4 sm:$0xff]   ;;  %v3464_v12 = vld [vmem:[#allocation2 + $0x64] ss:$16 sps:$4 sm:$0xff]   ;;  %v3466_v13 = vld [vmem:[#allocation2 + $0x6c] ss:$16 sps:$4 sm:$0xff]  }
  0x3c   :  { %v3468_v14 = vld [vmem:[#allocation2 + $0x60] ss:$16 sps:$4 sm:$0xff]   ;;  %v3469_v15 = vld [vmem:[#allocation2 + $0x68] ss:$16 sps:$4 sm:$0xff]   ;;  %v3470_v16 = vld [vmem:[#allocation2 + $0x84] ss:$16 sps:$4 sm:$0xff]  }
  0x3d   :  { %1325 = vmatpush1.bf16.msra.mxu0 %v3456_v6  ;;  %1489 = vmatpush1.bf16.msra.mxu1 %v3457_v7  ;;  %v3472_v17 = vld [vmem:[#allocation2 + $0x8c] ss:$16 sps:$4 sm:$0xff]   ;;  %v3474_v18 = vld [vmem:[#allocation2 + $0x80] ss:$16 sps:$4 sm:$0xff]   ;;  %v3475_v19 = vld [vmem:[#allocation2 + $0x88] ss:$16 sps:$4 sm:$0xff]  }
  0x3e   :  { %1326 = vmatprep.subr.bf16.mxu0 %v3458_v8  ;;  %1490 = vmatprep.subr.bf16.mxu1 %v3460_v9  ;;  %v3476_v20 = vld [vmem:[#allocation2 + $0xa4] ss:$16 sps:$4 sm:$0xff]   ;;  %v3478_v21 = vld [vmem:[#allocation2 + $0xac] ss:$16 sps:$4 sm:$0xff]   ;;  %v3480_v22 = vld [vmem:[#allocation2 + $0xa0] ss:$16 sps:$4 sm:$0xff]  }
  0x3f   :  { %v3481_v23 = vld [vmem:[#allocation2 + $0xa8] ss:$16 sps:$4 sm:$0xff]   ;;  %v3482_v24 = vld [vmem:[#allocation2 + $0xc4] ss:$16 sps:$4 sm:$0xff]   ;;  %v3484_v25 = vld [vmem:[#allocation2 + $0xcc] ss:$16 sps:$4 sm:$0xff]  }
  0x40   :  { %v3486_v26 = vld [vmem:[#allocation2 + $0xc0] ss:$16 sps:$4 sm:$0xff]   ;;  %v3487_v27 = vld [vmem:[#allocation2 + $0xc8] ss:$16 sps:$4 sm:$0xff]   ;;  %v3488_v28 = vld [vmem:[#allocation2 + $0xe4] ss:$16 sps:$4 sm:$0xff]  }
  0x41   :  { %1327 = vmatpush1.bf16.msra.mxu0 %v3462_v10  ;;  %1491 = vmatpush1.bf16.msra.mxu1 %v3463_v11  ;;  %v3490_v29 = vld [vmem:[#allocation2 + $0xec] ss:$16 sps:$4 sm:$0xff]   ;;  %v3492_v30 = vld [vmem:[#allocation2 + $0xe0] ss:$16 sps:$4 sm:$0xff]   ;;  %v3493_v31 = vld [vmem:[#allocation2 + $0xe8] ss:$16 sps:$4 sm:$0xff]  }
  0x42   :  { %1328 = vmatprep.subr.bf16.mxu0 %v3464_v12  ;;  %1492 = vmatprep.subr.bf16.mxu1 %v3466_v13  ;;  %v3494_v32 = vld [vmem:[#allocation2 + $0x104] ss:$16 sps:$4 sm:$0xff]   ;;  %v3496_v33 = vld [vmem:[#allocation2 + $0x10c] ss:$16 sps:$4 sm:$0xff]   ;;  %v3498_v34 = vld [vmem:[#allocation2 + $0x100] ss:$16 sps:$4 sm:$0xff]  }
  0x43   :  { %v3499_v35 = vld [vmem:[#allocation2 + $0x108] ss:$16 sps:$4 sm:$0xff]   ;;  %v4071_v36 = vmov 1983009808   ;;  %v3500_v39 = vld [vmem:[#allocation2 + $0x124] ss:$16 sps:$4 sm:$0xff]  }
  0x44   :  { %v75_v37 = vunpack.c.l.s4 %v4071_v36  ;;  %v3502_v40 = vld [vmem:[#allocation2 + $0x12c] ss:$16 sps:$4 sm:$0xff]   ;;  %v3504_v41 = vld [vmem:[#allocation2 + $0x120] ss:$16 sps:$4 sm:$0xff]   ;;  %v4157_v43 = vshrl.u32 %v77_v38, 7  ;;  %vm1318_vm0 = vcmask 130048  }
  0x45   :  { %1329 = vmatpush1.bf16.msra.mxu0 %v3468_v14  ;;  %1493 = vmatpush1.bf16.msra.mxu1 %v3469_v15  ;;  %v3505_v44 = vld [vmem:[#allocation2 + $0x128] ss:$16 sps:$4 sm:$0xff]   ;;  %v3506_v45 = vld [vmem:[#allocation2 + $0x144] ss:$16 sps:$4 sm:$0xff]   ;;  %v3508_v46 = vld [vmem:[#allocation2 + $0x14c] ss:$16 sps:$4 sm:$0xff]  }
  0x46   :  { %1330 = vmatprep.subr.bf16.mxu0 %v3470_v16  ;;  %1494 = vmatprep.subr.bf16.mxu1 %v3472_v17  ;;  %v76_v42 = vunpack.c.0.s8 %v75_v37  ;;  %v3510_v47 = vld [vmem:[#allocation2 + $0x140] ss:$16 sps:$4 sm:$0xff]   ;;  %v3511_v48 = vld [vmem:[#allocation2 + $0x148] ss:$16 sps:$4 sm:$0xff]   ;;  %v3512_v50 = vld [vmem:[#allocation2 + $0x164] ss:$16 sps:$4 sm:$0xff]  }
  0x47   :  { %v3514_v51 = vld [vmem:[#allocation2 + $0x16c] ss:$16 sps:$4 sm:$0xff]   ;;  %v69_v52 = vld [vmem:[%s4239_s0] sm:$0xff]  ;;  %v3517_v55 = vld [vmem:[#allocation2 + $0x168] ss:$16 sps:$4 sm:$0xff]   ;;  %vm2963_vm1 = vcmask 1041408  }
  0x48   :  { %v4160_v49 = vsub.s32 %v76_v42, %v4157_v43  ;;  %v3516_v53 = vld [vmem:[#allocation2 + $0x160] ss:$16 sps:$4 sm:$0xff]   ;;  %v3518_v56 = vld [vmem:[#allocation2 + $0x184] ss:$16 sps:$4 sm:$0xff]   ;;  %v3520_v57 = vld [vmem:[#allocation2 + $0x18c] ss:$16 sps:$4 sm:$0xff]   ;;  %v73_v4 = vcombine.high %v69_v52, %v69_v52 }
  0x49   :  { %1331 = vmatpush1.bf16.msra.mxu0 %v3474_v18  ;;  %1495 = vmatpush1.bf16.msra.mxu1 %v3475_v19  ;;  %v3522_v59 = vld [vmem:[#allocation2 + $0x180] ss:$16 sps:$4 sm:$0xff]   ;;  %v3523_v61 = vld [vmem:[#allocation2 + $0x188] ss:$16 sps:$4 sm:$0xff]   ;;  %v3524_v62 = vld [vmem:[#allocation2 + $0x1a4] ss:$16 sps:$4 sm:$0xff]  }
  0x4a   :  { %1332 = vmatprep.subr.bf16.mxu0 %v3476_v20  ;;  %1496 = vmatprep.subr.bf16.mxu1 %v3478_v21  ;;  %v80_v54 = vrot.slane %v69_v52, %v4160_v49  ;;  %v3526_v63 = vld [vmem:[#allocation2 + $0x1ac] ss:$16 sps:$4 sm:$0xff]   ;;  %v3528_v0 = vld [vmem:[#allocation2 + $0x1a0] ss:$16 sps:$4 sm:$0xff]   ;;  %v3529_v1 = vld [vmem:[#allocation2 + $0x1a8] ss:$16 sps:$4 sm:$0xff]   ;;  %v4167_v9 = vrot.slane %v73_v4, %v4160_v49 }
  0x4b   :  { %v3530_v2 = vld [vmem:[#allocation2 + $0x1c4] ss:$16 sps:$4 sm:$0xff]   ;;  %v3532_v3 = vld [vmem:[#allocation2 + $0x1cc] ss:$16 sps:$4 sm:$0xff]   ;;  %v3534_v5 = vld [vmem:[#allocation2 + $0x1c0] ss:$16 sps:$4 sm:$0xff]  }
  0x4c   :  { %v88_v58 = vcombine.high %v80_v54, %v80_v54  ;;  %v3535_v6 = vld [vmem:[#allocation2 + $0x1c8] ss:$16 sps:$4 sm:$0xff]   ;;  %v3536_v7 = vld [vmem:[#allocation2 + $0x1e4] ss:$16 sps:$4 sm:$0xff]   ;;  %v3538_v8 = vld [vmem:[#allocation2 + $0x1ec] ss:$16 sps:$4 sm:$0xff]   ;;  %v89_v14 = vcombine.high %v4167_v9, %v4167_v9  ;;  %v113_v16 = vpack.c.bf16 %v80_v54, %v80_v54 }
  0x4d   :  { %1333 = vmatpush1.bf16.msra.mxu0 %v3480_v22  ;;  %1497 = vmatpush1.bf16.msra.mxu1 %v3481_v23  ;;  %v3540_v10 = vld [vmem:[#allocation2 + $0x1e0] ss:$16 sps:$4 sm:$0xff]   ;;  %v3541_v11 = vld [vmem:[#allocation2 + $0x1e8] ss:$16 sps:$4 sm:$0xff]   ;;  %v3545_v12 = vld [vmem:[#allocation2 + $0x204] ss:$16 sps:$4 sm:$0xff]  }
  0x4e   :  { %1334 = vmatprep.subr.bf16.mxu0 %v3482_v24  ;;  %1498 = vmatprep.subr.bf16.mxu1 %v3484_v25  ;;  %v114_v60 = vpack.c.bf16 %v88_v58, %v88_v58  ;;  %v3548_v13 = vld [vmem:[#allocation2 + $0x20c] ss:$16 sps:$4 sm:$0xff]   ;;  %v3543_v15 = vld [vmem:[#allocation2 + $0x200] ss:$16 sps:$4 sm:$0xff]   ;;  %v3546_v17 = vld [vmem:[#allocation2 + $0x208] ss:$16 sps:$4 sm:$0xff]   ;;  %v116_v20 = vpack.c.bf16 %v89_v14, %v89_v14 }
  0x4f   :  { %v3551_v18 = vld [vmem:[#allocation2 + $0x224] ss:$16 sps:$4 sm:$0xff]   ;;  %v3554_v19 = vld [vmem:[#allocation2 + $0x22c] ss:$16 sps:$4 sm:$0xff]   ;;  %v3549_v21 = vld [vmem:[#allocation2 + $0x220] ss:$16 sps:$4 sm:$0xff]  }
  0x50   :  { %1354 = vmatprep.mubr.bf16.mxu0 %v114_v60  ;;  %1518 = vmatprep.mubr.bf16.mxu1 %v114_v60  ;;  %v3552_v22 = vld [vmem:[#allocation2 + $0x228] ss:$16 sps:$4 sm:$0xff]   ;;  %v3557_v23 = vld [vmem:[#allocation2 + $0x244] ss:$16 sps:$4 sm:$0xff]   ;;  %v3560_v24 = vld [vmem:[#allocation2 + $0x24c] ss:$16 sps:$4 sm:$0xff]  }
  0x51   :  { %1335 = vmatpush1.bf16.msra.mxu0 %v3486_v26  ;;  %1499 = vmatpush1.bf16.msra.mxu1 %v3487_v27  ;;  %v3555_v25 = vld [vmem:[#allocation2 + $0x240] ss:$16 sps:$4 sm:$0xff]   ;;  %v3558_v26 = vld [vmem:[#allocation2 + $0x248] ss:$16 sps:$4 sm:$0xff]   ;;  %v3563_v27 = vld [vmem:[#allocation2 + $0x264] ss:$16 sps:$4 sm:$0xff]  }
  0x52   :  { %1336 = vmatprep.subr.bf16.mxu0 %v3488_v28  ;;  %1500 = vmatprep.subr.bf16.mxu1 %v3490_v29  ;;  %v3566_v28 = vld [vmem:[#allocation2 + $0x26c] ss:$16 sps:$4 sm:$0xff]   ;;  %v3561_v29 = vld [vmem:[#allocation2 + $0x260] ss:$16 sps:$4 sm:$0xff]   ;;  %v3576_v38 = vld [vmem:[#allocation2 + $0x2a8] ss:$16 sps:$4 sm:$0xff]  }
  0x53   :  { %v3578_v36 = vld [vmem:[#allocation2 + $0x2ac] ss:$16 sps:$4 sm:$0xff]   ;;  %v3573_v37 = vld [vmem:[#allocation2 + $0x2a0] ss:$16 sps:$4 sm:$0xff]   ;;  %v3582_v42 = vld [vmem:[#allocation2 + $0x2c8] ss:$16 sps:$4 sm:$0xff]  }
  0x54   :  { %v3594_v52 = vld [vmem:[#allocation2 + $0x308] ss:$16 sps:$4 sm:$0xff]   ;;  %v3602_v54 = vld [vmem:[#allocation2 + $0x32c] ss:$16 sps:$4 sm:$0xff]   ;;  %v3635_v14 = vld [vmem:[#allocation2 + $0x3e4] ss:$16 sps:$4 sm:$0xff]  }
  0x55   :  { %1337 = vmatpush1.bf16.msra.mxu0 %v3492_v30  ;;  %1501 = vmatpush1.bf16.msra.mxu1 %v3493_v31  ;;  %v3564_v30 = vld [vmem:[#allocation2 + $0x268] ss:$16 sps:$4 sm:$0xff]   ;;  %v3569_v31 = vld [vmem:[#allocation2 + $0x284] ss:$16 sps:$4 sm:$0xff]   ;;  %v3608_v58 = vld [vmem:[#allocation2 + $0x34c] ss:$16 sps:$4 sm:$0xff]  }
  0x56   :  { %1338 = vmatprep.subr.bf16.mxu0 %v3494_v32  ;;  %1502 = vmatprep.subr.bf16.mxu1 %v3496_v33  ;;  %v3572_v32 = vld [vmem:[#allocation2 + $0x28c] ss:$16 sps:$4 sm:$0xff]   ;;  %v3567_v33 = vld [vmem:[#allocation2 + $0x280] ss:$16 sps:$4 sm:$0xff]   ;;  %v3606_v60 = vld [vmem:[#allocation2 + $0x348] ss:$16 sps:$4 sm:$0xff]  }
  0x57   :  { %v3618_v4 = vld [vmem:[#allocation2 + $0x388] ss:$16 sps:$4 sm:$0xff]  }
  0x59   :  { %1339 = vmatpush1.bf16.msra.mxu0 %v3498_v34  ;;  %1503 = vmatpush1.bf16.msra.mxu1 %v3499_v35  ;;  %v3570_v34 = vld [vmem:[#allocation2 + $0x288] ss:$16 sps:$4 sm:$0xff]   ;;  %v3575_v35 = vld [vmem:[#allocation2 + $0x2a4] ss:$16 sps:$4 sm:$0xff]  }
  0x5a   :  { %1340 = vmatprep.subr.bf16.mxu0 %v3500_v39  ;;  %1504 = vmatprep.subr.bf16.mxu1 %v3502_v40  ;;  %v3581_v39 = vld [vmem:[#allocation2 + $0x2c4] ss:$16 sps:$4 sm:$0xff]   ;;  %v3584_v40 = vld [vmem:[#allocation2 + $0x2cc] ss:$16 sps:$4 sm:$0xff]  }
  0x5d   :  { %1341 = vmatpush1.bf16.msra.mxu0 %v3504_v41  ;;  %1505 = vmatpush1.bf16.msra.mxu1 %v3505_v44  ;;  %v3579_v41 = vld [vmem:[#allocation2 + $0x2c0] ss:$16 sps:$4 sm:$0xff]   ;;  %v3587_v44 = vld [vmem:[#allocation2 + $0x2e4] ss:$16 sps:$4 sm:$0xff]  }
  0x5e   :  { %1342 = vmatprep.subr.bf16.mxu0 %v3506_v45  ;;  %1506 = vmatprep.subr.bf16.mxu1 %v3508_v46  ;;  %v3590_v45 = vld [vmem:[#allocation2 + $0x2ec] ss:$16 sps:$4 sm:$0xff]   ;;  %v3585_v46 = vld [vmem:[#allocation2 + $0x2e0] ss:$16 sps:$4 sm:$0xff]  }
  0x61   :  { %1343 = vmatpush1.bf16.msra.mxu0 %v3510_v47  ;;  %1507 = vmatpush1.bf16.msra.mxu1 %v3511_v48  ;;  %v3588_v47 = vld [vmem:[#allocation2 + $0x2e8] ss:$16 sps:$4 sm:$0xff]   ;;  %v3593_v48 = vld [vmem:[#allocation2 + $0x304] ss:$16 sps:$4 sm:$0xff]  }
  0x62   :  { %1344 = vmatprep.subr.bf16.mxu0 %v3512_v50  ;;  %1508 = vmatprep.subr.bf16.mxu1 %v3514_v51  ;;  %v3596_v50 = vld [vmem:[#allocation2 + $0x30c] ss:$16 sps:$4 sm:$0xff]   ;;  %v3591_v51 = vld [vmem:[#allocation2 + $0x300] ss:$16 sps:$4 sm:$0xff]  }
  0x65   :  { %1345 = vmatpush1.bf16.msra.mxu0 %v3516_v53  ;;  %1509 = vmatpush1.bf16.msra.mxu1 %v3517_v55  ;;  %v3599_v53 = vld [vmem:[#allocation2 + $0x324] ss:$16 sps:$4 sm:$0xff]   ;;  %v3597_v55 = vld [vmem:[#allocation2 + $0x320] ss:$16 sps:$4 sm:$0xff]  }
  0x66   :  { %1346 = vmatprep.subr.bf16.mxu0 %v3518_v56  ;;  %1510 = vmatprep.subr.bf16.mxu1 %v3520_v57  ;;  %v3600_v56 = vld [vmem:[#allocation2 + $0x328] ss:$16 sps:$4 sm:$0xff]   ;;  %v3605_v57 = vld [vmem:[#allocation2 + $0x344] ss:$16 sps:$4 sm:$0xff]  }
  0x69   :  { %1347 = vmatpush1.bf16.msra.mxu0 %v3522_v59  ;;  %1511 = vmatpush1.bf16.msra.mxu1 %v3523_v61  ;;  %v3603_v59 = vld [vmem:[#allocation2 + $0x340] ss:$16 sps:$4 sm:$0xff]   ;;  %v3611_v61 = vld [vmem:[#allocation2 + $0x364] ss:$16 sps:$4 sm:$0xff]  }
  0x6a   :  { %1348 = vmatprep.subr.bf16.mxu0 %v3524_v62  ;;  %1512 = vmatprep.subr.bf16.mxu1 %v3526_v63  ;;  %v3614_v62 = vld [vmem:[#allocation2 + $0x36c] ss:$16 sps:$4 sm:$0xff]   ;;  %v3609_v63 = vld [vmem:[#allocation2 + $0x360] ss:$16 sps:$4 sm:$0xff]  }
  0x6d   :  { %1349 = vmatpush1.bf16.msra.mxu0 %v3528_v0  ;;  %1513 = vmatpush1.bf16.msra.mxu1 %v3529_v1  ;;  %v3612_v0 = vld [vmem:[#allocation2 + $0x368] ss:$16 sps:$4 sm:$0xff]   ;;  %v3617_v1 = vld [vmem:[#allocation2 + $0x384] ss:$16 sps:$4 sm:$0xff]  }
  0x6e   :  { %1350 = vmatprep.subr.bf16.mxu0 %v3530_v2  ;;  %1514 = vmatprep.subr.bf16.mxu1 %v3532_v3  ;;  %v3620_v2 = vld [vmem:[#allocation2 + $0x38c] ss:$16 sps:$4 sm:$0xff]   ;;  %v3615_v3 = vld [vmem:[#allocation2 + $0x380] ss:$16 sps:$4 sm:$0xff]  }
  0x71   :  { %1351 = vmatpush1.bf16.msra.mxu0 %v3534_v5  ;;  %1515 = vmatpush1.bf16.msra.mxu1 %v3535_v6  ;;  %v3623_v5 = vld [vmem:[#allocation2 + $0x3a4] ss:$16 sps:$4 sm:$0xff]   ;;  %v3626_v6 = vld [vmem:[#allocation2 + $0x3ac] ss:$16 sps:$4 sm:$0xff]  }
  0x72   :  { %1352 = vmatprep.subr.bf16.mxu0 %v3536_v7  ;;  %1516 = vmatprep.subr.bf16.mxu1 %v3538_v8  ;;  %v3621_v7 = vld [vmem:[#allocation2 + $0x3a0] ss:$16 sps:$4 sm:$0xff]   ;;  %v3624_v8 = vld [vmem:[#allocation2 + $0x3a8] ss:$16 sps:$4 sm:$0xff]  }
  0x75   :  { %1353 = vmatpush1.bf16.msra.mxu0 %v3540_v10  ;;  %1517 = vmatpush1.bf16.msra.mxu1 %v3541_v11  ;;  %v3629_v10 = vld [vmem:[#allocation2 + $0x3c4] ss:$16 sps:$4 sm:$0xff]   ;;  %v3632_v11 = vld [vmem:[#allocation2 + $0x3cc] ss:$16 sps:$4 sm:$0xff]  }
  0x76   :  { %1363 = vmatprep.subr.bf16.mxu0 %v3545_v12  ;;  %1527 = vmatprep.subr.bf16.mxu1 %v3548_v13  ;;  %v3627_v12 = vld [vmem:[#allocation2 + $0x3c0] ss:$16 sps:$4 sm:$0xff]   ;;  %v3630_v13 = vld [vmem:[#allocation2 + $0x3c8] ss:$16 sps:$4 sm:$0xff]  }
  0x78   :  { %1355 = vmatmul.mubr.bf16.vlgmr.msra.gmra.mrb[0].mxu0 %v113_v16  ;;  %1519 = vmatmul.mubr.bf16.vlgmr.msra.gmra.mrb[0].mxu1 %v113_v16  ;;  %v3633_v16 = vld [vmem:[#allocation2 + $0x3e0] ss:$16 sps:$4 sm:$0xff]  }
  0x79   :  { %1364 = vmatpush1.bf16.msra.mxu0 %v3543_v15  ;;  %1528 = vmatpush1.bf16.msra.mxu1 %v3546_v17  ;;  %v3638_v15 = vld [vmem:[#allocation2 + $0x3ec] ss:$16 sps:$4 sm:$0xff]   ;;  %v3636_v17 = vld [vmem:[#allocation2 + $0x3e8] ss:$16 sps:$4 sm:$0xff]  }
  0x7a   :  { %1365 = vmatprep.subr.bf16.mxu0 %v3551_v18  ;;  %1529 = vmatprep.subr.bf16.mxu1 %v3554_v19  ;;  %v3641_v18 = vld [vmem:[#allocation2 + $0x404] ss:$16 sps:$4 sm:$0xff]   ;;  %v3644_v19 = vld [vmem:[#allocation2 + $0x40c] ss:$16 sps:$4 sm:$0xff]  }
  0x7b   :  { %1395 = vmatprep.mubr.bf16.mxu0 %v116_v20  ;;  %1559 = vmatprep.mubr.bf16.mxu1 %v116_v20  ;;  %v3639_v20 = vld [vmem:[#allocation2 + $0x400] ss:$16 sps:$4 sm:$0xff]  }
  0x7d   :  { %1366 = vmatpush1.bf16.msra.mxu0 %v3549_v21  ;;  %1530 = vmatpush1.bf16.msra.mxu1 %v3552_v22  ;;  %v115_v21 = vpack.c.bf16 %v4167_v9, %v4167_v9  ;;  %v3642_v22 = vld [vmem:[#allocation2 + $0x408] ss:$16 sps:$4 sm:$0xff]  }
  0x7e   :  { %1367 = vmatprep.subr.bf16.mxu0 %v3557_v23  ;;  %1531 = vmatprep.subr.bf16.mxu1 %v3560_v24  ;;  %v4176_v23 = vld [vmem:[%s4239_s0 + $0x8] sm:$0x3f]  ;;  %v3647_v24 = vld [vmem:[#allocation2 + $0x424] ss:$16 sps:$4 sm:$0xff]  }
  0x81   :  { %1368 = vmatpush1.bf16.msra.mxu0 %v3555_v25  ;;  %1532 = vmatpush1.bf16.msra.mxu1 %v3558_v26  ;;  %v3650_v25 = vld [vmem:[#allocation2 + $0x42c] ss:$16 sps:$4 sm:$0xff]   ;;  %v4180_v26 = vrot.slane %v4176_v23, %v4160_v49 }
  0x82   :  { %1369 = vmatprep.subr.bf16.mxu0 %v3563_v27  ;;  %1533 = vmatprep.subr.bf16.mxu1 %v3566_v28  ;;  %v3645_v27 = vld [vmem:[#allocation2 + $0x420] ss:$16 sps:$4 sm:$0xff]   ;;  %v3648_v28 = vld [vmem:[#allocation2 + $0x428] ss:$16 sps:$4 sm:$0xff]  }
  0x83   :  { %v105_v9 = vcombine.high %v4180_v26, %v4180_v26 }
  0x85   :  { %1370 = vmatpush1.bf16.msra.mxu0 %v3561_v29  ;;  %1534 = vmatpush1.bf16.msra.mxu1 %v3564_v30  ;;  %v3653_v29 = vld [vmem:[#allocation2 + $0x444] ss:$16 sps:$4 sm:$0xff]   ;;  %v3656_v30 = vld [vmem:[#allocation2 + $0x44c] ss:$16 sps:$4 sm:$0xff]  }
  0x86   :  { %1371 = vmatprep.subr.bf16.mxu0 %v3569_v31  ;;  %1535 = vmatprep.subr.bf16.mxu1 %v3572_v32  ;;  %v118_v31 = vpack.c.bf16 %v105_v9, %v105_v9  ;;  %v3651_v32 = vld [vmem:[#allocation2 + $0x440] ss:$16 sps:$4 sm:$0xff]   ;;  %v3738_v9 = vld [vmem:[#allocation2 + $0x604] ss:$16 sps:$4 sm:$0xff]  }
  0x89   :  { %1372 = vmatpush1.bf16.msra.mxu0 %v3567_v33  ;;  %1536 = vmatpush1.bf16.msra.mxu1 %v3570_v34  ;;  %v3654_v33 = vld [vmem:[#allocation2 + $0x448] ss:$16 sps:$4 sm:$0xff]   ;;  %v3659_v34 = vld [vmem:[#allocation2 + $0x464] ss:$16 sps:$4 sm:$0xff]  }
  0x8a   :  { %1373 = vmatprep.subr.bf16.mxu0 %v3575_v35  ;;  %1537 = vmatprep.subr.bf16.mxu1 %v3578_v36  ;;  %v3662_v35 = vld [vmem:[#allocation2 + $0x46c] ss:$16 sps:$4 sm:$0xff]   ;;  %v3657_v36 = vld [vmem:[#allocation2 + $0x460] ss:$16 sps:$4 sm:$0xff]  }
  0x8d   :  { %1374 = vmatpush1.bf16.msra.mxu0 %v3573_v37  ;;  %1538 = vmatpush1.bf16.msra.mxu1 %v3576_v38  ;;  %v3660_v37 = vld [vmem:[#allocation2 + $0x468] ss:$16 sps:$4 sm:$0xff]   ;;  %v3665_v38 = vld [vmem:[#allocation2 + $0x484] ss:$16 sps:$4 sm:$0xff]  }
  0x8e   :  { %1375 = vmatprep.subr.bf16.mxu0 %v3581_v39  ;;  %1539 = vmatprep.subr.bf16.mxu1 %v3584_v40  ;;  %v3668_v39 = vld [vmem:[#allocation2 + $0x48c] ss:$16 sps:$4 sm:$0xff]   ;;  %v3663_v40 = vld [vmem:[#allocation2 + $0x480] ss:$16 sps:$4 sm:$0xff]  }
  0x91   :  { %1376 = vmatpush1.bf16.msra.mxu0 %v3579_v41  ;;  %1540 = vmatpush1.bf16.msra.mxu1 %v3582_v42  ;;  %v3666_v41 = vld [vmem:[#allocation2 + $0x488] ss:$16 sps:$4 sm:$0xff]   ;;  %v3671_v42 = vld [vmem:[#allocation2 + $0x4a4] ss:$16 sps:$4 sm:$0xff]  }
  0x92   :  { %1377 = vmatprep.subr.bf16.mxu0 %v3587_v44  ;;  %1541 = vmatprep.subr.bf16.mxu1 %v3590_v45  ;;  %v3674_v44 = vld [vmem:[#allocation2 + $0x4ac] ss:$16 sps:$4 sm:$0xff]   ;;  %v3669_v45 = vld [vmem:[#allocation2 + $0x4a0] ss:$16 sps:$4 sm:$0xff]  }
  0x95   :  { %1378 = vmatpush1.bf16.msra.mxu0 %v3585_v46  ;;  %1542 = vmatpush1.bf16.msra.mxu1 %v3588_v47  ;;  %v3672_v46 = vld [vmem:[#allocation2 + $0x4a8] ss:$16 sps:$4 sm:$0xff]   ;;  %v3677_v47 = vld [vmem:[#allocation2 + $0x4c4] ss:$16 sps:$4 sm:$0xff]  }
  0x96   :  { %1379 = vmatprep.subr.bf16.mxu0 %v3593_v48  ;;  %1543 = vmatprep.subr.bf16.mxu1 %v3596_v50  ;;  %v3680_v48 = vld [vmem:[#allocation2 + $0x4cc] ss:$16 sps:$4 sm:$0xff]   ;;  %v3675_v50 = vld [vmem:[#allocation2 + $0x4c0] ss:$16 sps:$4 sm:$0xff]  }
  0x99   :  { %1380 = vmatpush1.bf16.msra.mxu0 %v3591_v51  ;;  %1544 = vmatpush1.bf16.msra.mxu1 %v3594_v52  ;;  %v3678_v51 = vld [vmem:[#allocation2 + $0x4c8] ss:$16 sps:$4 sm:$0xff]   ;;  %v3683_v52 = vld [vmem:[#allocation2 + $0x4e4] ss:$16 sps:$4 sm:$0xff]  }
  0x9a   :  { %1381 = vmatprep.subr.bf16.mxu0 %v3599_v53  ;;  %1545 = vmatprep.subr.bf16.mxu1 %v3602_v54  ;;  %v3686_v53 = vld [vmem:[#allocation2 + $0x4ec] ss:$16 sps:$4 sm:$0xff]   ;;  %v3681_v54 = vld [vmem:[#allocation2 + $0x4e0] ss:$16 sps:$4 sm:$0xff]  }
  0x9d   :  { %1382 = vmatpush1.bf16.msra.mxu0 %v3597_v55  ;;  %1546 = vmatpush1.bf16.msra.mxu1 %v3600_v56  ;;  %v3684_v55 = vld [vmem:[#allocation2 + $0x4e8] ss:$16 sps:$4 sm:$0xff]   ;;  %v3689_v56 = vld [vmem:[#allocation2 + $0x504] ss:$16 sps:$4 sm:$0xff]  }
  0x9e   :  { %1383 = vmatprep.subr.bf16.mxu0 %v3605_v57  ;;  %1547 = vmatprep.subr.bf16.mxu1 %v3608_v58  ;;  %v3692_v57 = vld [vmem:[#allocation2 + $0x50c] ss:$16 sps:$4 sm:$0xff]   ;;  %v3687_v58 = vld [vmem:[#allocation2 + $0x500] ss:$16 sps:$4 sm:$0xff]  }
  0xa1   :  { %1384 = vmatpush1.bf16.msra.mxu0 %v3603_v59  ;;  %1548 = vmatpush1.bf16.msra.mxu1 %v3606_v60  ;;  %v3690_v59 = vld [vmem:[#allocation2 + $0x508] ss:$16 sps:$4 sm:$0xff]   ;;  %v3695_v60 = vld [vmem:[#allocation2 + $0x524] ss:$16 sps:$4 sm:$0xff]  }
  0xa2   :  { %1385 = vmatprep.subr.bf16.mxu0 %v3611_v61  ;;  %1549 = vmatprep.subr.bf16.mxu1 %v3614_v62  ;;  %v3698_v61 = vld [vmem:[#allocation2 + $0x52c] ss:$16 sps:$4 sm:$0xff]   ;;  %v3693_v62 = vld [vmem:[#allocation2 + $0x520] ss:$16 sps:$4 sm:$0xff]  }
  0xa5   :  { %1386 = vmatpush1.bf16.msra.mxu0 %v3609_v63  ;;  %1550 = vmatpush1.bf16.msra.mxu1 %v3612_v0  ;;  %v3696_v63 = vld [vmem:[#allocation2 + $0x528] ss:$16 sps:$4 sm:$0xff]   ;;  %v3701_v0 = vld [vmem:[#allocation2 + $0x544] ss:$16 sps:$4 sm:$0xff]  }
  0xa6   :  { %1387 = vmatprep.subr.bf16.mxu0 %v3617_v1  ;;  %1551 = vmatprep.subr.bf16.mxu1 %v3620_v2  ;;  %v3704_v1 = vld [vmem:[#allocation2 + $0x54c] ss:$16 sps:$4 sm:$0xff]   ;;  %v3699_v2 = vld [vmem:[#allocation2 + $0x540] ss:$16 sps:$4 sm:$0xff]  }
  0xa9   :  { %1388 = vmatpush1.bf16.msra.mxu0 %v3615_v3  ;;  %1552 = vmatpush1.bf16.msra.mxu1 %v3618_v4  ;;  %v3702_v3 = vld [vmem:[#allocation2 + $0x548] ss:$16 sps:$4 sm:$0xff]   ;;  %v3707_v4 = vld [vmem:[#allocation2 + $0x564] ss:$16 sps:$4 sm:$0xff]  }
  0xaa   :  { %1389 = vmatprep.subr.bf16.mxu0 %v3623_v5  ;;  %1553 = vmatprep.subr.bf16.mxu1 %v3626_v6  ;;  %v3710_v5 = vld [vmem:[#allocation2 + $0x56c] ss:$16 sps:$4 sm:$0xff]   ;;  %v3705_v6 = vld [vmem:[#allocation2 + $0x560] ss:$16 sps:$4 sm:$0xff]  }
  0xad   :  { %1390 = vmatpush1.bf16.msra.mxu0 %v3621_v7  ;;  %1554 = vmatpush1.bf16.msra.mxu1 %v3624_v8  ;;  %v3708_v7 = vld [vmem:[#allocation2 + $0x568] ss:$16 sps:$4 sm:$0xff]   ;;  %v3713_v8 = vld [vmem:[#allocation2 + $0x584] ss:$16 sps:$4 sm:$0xff]  }
  0xae   :  { %1391 = vmatprep.subr.bf16.mxu0 %v3629_v10  ;;  %1555 = vmatprep.subr.bf16.mxu1 %v3632_v11  ;;  %v3716_v10 = vld [vmem:[#allocation2 + $0x58c] ss:$16 sps:$4 sm:$0xff]   ;;  %v3711_v11 = vld [vmem:[#allocation2 + $0x580] ss:$16 sps:$4 sm:$0xff]  }
  0xb1   :  { %1392 = vmatpush1.bf16.msra.mxu0 %v3627_v12  ;;  %1556 = vmatpush1.bf16.msra.mxu1 %v3630_v13  ;;  %v3714_v12 = vld [vmem:[#allocation2 + $0x588] ss:$16 sps:$4 sm:$0xff]   ;;  %v3719_v13 = vld [vmem:[#allocation2 + $0x5a4] ss:$16 sps:$4 sm:$0xff]  }
  0xb2   :  { %1393 = vmatprep.subr.bf16.mxu0 %v3635_v14  ;;  %1557 = vmatprep.subr.bf16.mxu1 %v3638_v15  ;;  %v3722_v14 = vld [vmem:[#allocation2 + $0x5ac] ss:$16 sps:$4 sm:$0xff]   ;;  %v3717_v15 = vld [vmem:[#allocation2 + $0x5a0] ss:$16 sps:$4 sm:$0xff]  }
  0xb5   :  { %1394 = vmatpush1.bf16.msra.mxu0 %v3633_v16  ;;  %1558 = vmatpush1.bf16.msra.mxu1 %v3636_v17  ;;  %v3720_v16 = vld [vmem:[#allocation2 + $0x5a8] ss:$16 sps:$4 sm:$0xff]   ;;  %v3725_v17 = vld [vmem:[#allocation2 + $0x5c4] ss:$16 sps:$4 sm:$0xff]  }
  0xb6   :  { %1404 = vmatprep.subr.bf16.mxu0 %v3641_v18  ;;  %1568 = vmatprep.subr.bf16.mxu1 %v3644_v19  ;;  %v3728_v18 = vld [vmem:[#allocation2 + $0x5cc] ss:$16 sps:$4 sm:$0xff]   ;;  %v3723_v19 = vld [vmem:[#allocation2 + $0x5c0] ss:$16 sps:$4 sm:$0xff]  }
  0xb8   :  { %1396 = vmatmul.mubr.bf16.vlgmr.msra.gmra.mrb[0].mxu0 %v115_v21  ;;  %1560 = vmatmul.mubr.bf16.vlgmr.msra.gmra.mrb[0].mxu1 %v115_v21  ;;  %v3731_v21 = vld [vmem:[#allocation2 + $0x5e4] ss:$16 sps:$4 sm:$0xff]  }
  0xb9   :  { %1405 = vmatpush1.bf16.msra.mxu0 %v3639_v20  ;;  %1569 = vmatpush1.bf16.msra.mxu1 %v3642_v22  ;;  %v3726_v20 = vld [vmem:[#allocation2 + $0x5c8] ss:$16 sps:$4 sm:$0xff]   ;;  %v3734_v22 = vld [vmem:[#allocation2 + $0x5ec] ss:$16 sps:$4 sm:$0xff]  }
  0xba   :  { %1406 = vmatprep.subr.bf16.mxu0 %v3647_v24  ;;  %1570 = vmatprep.subr.bf16.mxu1 %v3650_v25  ;;  %v3729_v24 = vld [vmem:[#allocation2 + $0x5e0] ss:$16 sps:$4 sm:$0xff]   ;;  %v3732_v25 = vld [vmem:[#allocation2 + $0x5e8] ss:$16 sps:$4 sm:$0xff]  }
  0xbb   :  { %1436 = vmatprep.mubr.bf16.mxu0 %v118_v31  ;;  %1600 = vmatprep.mubr.bf16.mxu1 %v118_v31  ;;  %v3744_v31 = vld [vmem:[#allocation5 + $0x4] ss:$16 sps:$4 sm:$0xff]  }
  0xbd   :  { %1407 = vmatpush1.bf16.msra.mxu0 %v3645_v27  ;;  %1571 = vmatpush1.bf16.msra.mxu1 %v3648_v28  ;;  %v3741_v27 = vld [vmem:[#allocation2 + $0x60c] ss:$16 sps:$4 sm:$0xff]   ;;  %v3736_v28 = vld [vmem:[#allocation2 + $0x600] ss:$16 sps:$4 sm:$0xff]  }
  0xbe   :  { %1408 = vmatprep.subr.bf16.mxu0 %v3653_v29  ;;  %1572 = vmatprep.subr.bf16.mxu1 %v3656_v30  ;;  %v3739_v29 = vld [vmem:[#allocation2 + $0x608] ss:$16 sps:$4 sm:$0xff]   ;;  %v117_v30 = vpack.c.bf16 %v4180_v26, %v4180_v26 }
  0xc1   :  { %1409 = vmatpush1.bf16.msra.mxu0 %v3651_v32  ;;  %1573 = vmatpush1.bf16.msra.mxu1 %v3654_v33  ;;  %v3747_v32 = vld [vmem:[#allocation5 + $0xc] ss:$16 sps:$4 sm:$0xff]   ;;  %v90_v33 = vcombine.high %v4176_v23, %v4176_v23  ;;  %v3756_v23 = vld [vmem:[#allocation5 + $0x44] ss:$16 sps:$4 sm:$0xff]  }
  0xc2   :  { %1410 = vmatprep.subr.bf16.mxu0 %v3659_v34  ;;  %1574 = vmatprep.subr.bf16.mxu1 %v3662_v35  ;;  %v4072_v34 = vmov 0   ;;  %v3742_v35 = vld [vmem:[#allocation5] ss:$16 sps:$4 sm:$0xff]  }
  0xc3   :  { %v104_v26 = vrot.slane %v90_v33, %v4160_v49  ;;  %v3760_v49 = vld [vmem:[#allocation5 + $0x60] ss:$16 sps:$4 sm:$0xff]   ;;  %v3837_v33 = vld [vmem:[#allocation5 + $0x1ec] ss:$16 sps:$4 sm:$0xff]  }
  0xc5   :  { %1411 = vmatpush1.bf16.msra.mxu0 %v3657_v36  ;;  %1575 = vmatpush1.bf16.msra.mxu1 %v3660_v37  ;;  %v3745_v36 = vld [vmem:[#allocation5 + $0x8] ss:$16 sps:$4 sm:$0xff]   ;;  %v119_v37 = vpack.c.bf16 %v104_v26, %v104_v26 }
  0xc6   :  { %1412 = vmatprep.subr.bf16.mxu0 %v3665_v38  ;;  %1576 = vmatprep.subr.bf16.mxu1 %v3668_v39  ;;  %v3750_v38 = vld [vmem:[#allocation5 + $0x24] ss:$16 sps:$4 sm:$0xff]   ;;  %v3753_v39 = vld [vmem:[#allocation5 + $0x2c] ss:$16 sps:$4 sm:$0xff]   ;;  %v3835_v26 = vld [vmem:[#allocation5 + $0x1e8] ss:$16 sps:$4 sm:$0xff]  }
  0xc9   :  { %1413 = vmatpush1.bf16.msra.mxu0 %v3663_v40  ;;  %1577 = vmatpush1.bf16.msra.mxu1 %v3666_v41  ;;  %v3748_v40 = vld [vmem:[#allocation5 + $0x20] ss:$16 sps:$4 sm:$0xff]   ;;  %v3751_v41 = vld [vmem:[#allocation5 + $0x28] ss:$16 sps:$4 sm:$0xff]  }
  0xca   :  { %1414 = vmatprep.subr.bf16.mxu0 %v3671_v42  ;;  %1578 = vmatprep.subr.bf16.mxu1 %v3674_v44  ;;  %v3759_v42 = vld [vmem:[#allocation5 + $0x4c] ss:$16 sps:$4 sm:$0xff]   ;;  %v3754_v44 = vld [vmem:[#allocation5 + $0x40] ss:$16 sps:$4 sm:$0xff]  }
  0xcd   :  { %1415 = vmatpush1.bf16.msra.mxu0 %v3669_v45  ;;  %1579 = vmatpush1.bf16.msra.mxu1 %v3672_v46  ;;  %v3757_v45 = vld [vmem:[#allocation5 + $0x48] ss:$16 sps:$4 sm:$0xff]   ;;  %v3762_v46 = vld [vmem:[#allocation5 + $0x64] ss:$16 sps:$4 sm:$0xff]  }
  0xce   :  { %1416 = vmatprep.subr.bf16.mxu0 %v3677_v47  ;;  %1580 = vmatprep.subr.bf16.mxu1 %v3680_v48  ;;  %v3765_v47 = vld [vmem:[#allocation5 + $0x6c] ss:$16 sps:$4 sm:$0xff]   ;;  %v3763_v48 = vld [vmem:[#allocation5 + $0x68] ss:$16 sps:$4 sm:$0xff]  }
  0xd1   :  { %1417 = vmatpush1.bf16.msra.mxu0 %v3675_v50  ;;  %1581 = vmatpush1.bf16.msra.mxu1 %v3678_v51  ;;  %v3768_v50 = vld [vmem:[#allocation5 + $0x84] ss:$16 sps:$4 sm:$0xff]   ;;  %v3771_v51 = vld [vmem:[#allocation5 + $0x8c] ss:$16 sps:$4 sm:$0xff]  }
  0xd2   :  { %1418 = vmatprep.subr.bf16.mxu0 %v3683_v52  ;;  %1582 = vmatprep.subr.bf16.mxu1 %v3686_v53  ;;  %v3766_v52 = vld [vmem:[#allocation5 + $0x80] ss:$16 sps:$4 sm:$0xff]   ;;  %v3769_v53 = vld [vmem:[#allocation5 + $0x88] ss:$16 sps:$4 sm:$0xff]  }
  0xd5   :  { %1419 = vmatpush1.bf16.msra.mxu0 %v3681_v54  ;;  %1583 = vmatpush1.bf16.msra.mxu1 %v3684_v55  ;;  %v3774_v54 = vld [vmem:[#allocation5 + $0xa4] ss:$16 sps:$4 sm:$0xff]   ;;  %v3777_v55 = vld [vmem:[#allocation5 + $0xac] ss:$16 sps:$4 sm:$0xff]  }
  0xd6   :  { %1420 = vmatprep.subr.bf16.mxu0 %v3689_v56  ;;  %1584 = vmatprep.subr.bf16.mxu1 %v3692_v57  ;;  %v3772_v56 = vld [vmem:[#allocation5 + $0xa0] ss:$16 sps:$4 sm:$0xff]   ;;  %v3775_v57 = vld [vmem:[#allocation5 + $0xa8] ss:$16 sps:$4 sm:$0xff]  }
  0xd9   :  { %1421 = vmatpush1.bf16.msra.mxu0 %v3687_v58  ;;  %1585 = vmatpush1.bf16.msra.mxu1 %v3690_v59  ;;  %v3780_v58 = vld [vmem:[#allocation5 + $0xc4] ss:$16 sps:$4 sm:$0xff]   ;;  %v3783_v59 = vld [vmem:[#allocation5 + $0xcc] ss:$16 sps:$4 sm:$0xff]  }
  0xda   :  { %1422 = vmatprep.subr.bf16.mxu0 %v3695_v60  ;;  %1586 = vmatprep.subr.bf16.mxu1 %v3698_v61  ;;  %v3778_v60 = vld [vmem:[#allocation5 + $0xc0] ss:$16 sps:$4 sm:$0xff]   ;;  %v3781_v61 = vld [vmem:[#allocation5 + $0xc8] ss:$16 sps:$4 sm:$0xff]  }
  0xdd   :  { %1423 = vmatpush1.bf16.msra.mxu0 %v3693_v62  ;;  %1587 = vmatpush1.bf16.msra.mxu1 %v3696_v63  ;;  %v3786_v62 = vld [vmem:[#allocation5 + $0xe4] ss:$16 sps:$4 sm:$0xff]   ;;  %v3789_v63 = vld [vmem:[#allocation5 + $0xec] ss:$16 sps:$4 sm:$0xff]  }
  0xde   :  { %1424 = vmatprep.subr.bf16.mxu0 %v3701_v0  ;;  %1588 = vmatprep.subr.bf16.mxu1 %v3704_v1  ;;  %v3784_v0 = vld [vmem:[#allocation5 + $0xe0] ss:$16 sps:$4 sm:$0xff]   ;;  %v3787_v1 = vld [vmem:[#allocation5 + $0xe8] ss:$16 sps:$4 sm:$0xff]  }
  0xe1   :  { %1425 = vmatpush1.bf16.msra.mxu0 %v3699_v2  ;;  %1589 = vmatpush1.bf16.msra.mxu1 %v3702_v3  ;;  %v3792_v2 = vld [vmem:[#allocation5 + $0x104] ss:$16 sps:$4 sm:$0xff]   ;;  %v3795_v3 = vld [vmem:[#allocation5 + $0x10c] ss:$16 sps:$4 sm:$0xff]  }
  0xe2   :  { %1426 = vmatprep.subr.bf16.mxu0 %v3707_v4  ;;  %1590 = vmatprep.subr.bf16.mxu1 %v3710_v5  ;;  %v3790_v4 = vld [vmem:[#allocation5 + $0x100] ss:$16 sps:$4 sm:$0xff]   ;;  %v3793_v5 = vld [vmem:[#allocation5 + $0x108] ss:$16 sps:$4 sm:$0xff]  }
  0xe5   :  { %1427 = vmatpush1.bf16.msra.mxu0 %v3705_v6  ;;  %1591 = vmatpush1.bf16.msra.mxu1 %v3708_v7  ;;  %v3798_v6 = vld [vmem:[#allocation5 + $0x124] ss:$16 sps:$4 sm:$0xff]   ;;  %v3801_v7 = vld [vmem:[#allocation5 + $0x12c] ss:$16 sps:$4 sm:$0xff]  }
  0xe6   :  { %1428 = vmatprep.subr.bf16.mxu0 %v3713_v8  ;;  %1592 = vmatprep.subr.bf16.mxu1 %v3716_v10  ;;  %v3796_v8 = vld [vmem:[#allocation5 + $0x120] ss:$16 sps:$4 sm:$0xff]   ;;  %v3799_v10 = vld [vmem:[#allocation5 + $0x128] ss:$16 sps:$4 sm:$0xff]  }
  0xe9   :  { %1429 = vmatpush1.bf16.msra.mxu0 %v3711_v11  ;;  %1593 = vmatpush1.bf16.msra.mxu1 %v3714_v12  ;;  %v3804_v11 = vld [vmem:[#allocation5 + $0x144] ss:$16 sps:$4 sm:$0xff]   ;;  %v3807_v12 = vld [vmem:[#allocation5 + $0x14c] ss:$16 sps:$4 sm:$0xff]  }
  0xea   :  { %1430 = vmatprep.subr.bf16.mxu0 %v3719_v13  ;;  %1594 = vmatprep.subr.bf16.mxu1 %v3722_v14  ;;  %v3802_v13 = vld [vmem:[#allocation5 + $0x140] ss:$16 sps:$4 sm:$0xff]   ;;  %v3805_v14 = vld [vmem:[#allocation5 + $0x148] ss:$16 sps:$4 sm:$0xff]  }
  0xed   :  { %1431 = vmatpush1.bf16.msra.mxu0 %v3717_v15  ;;  %1595 = vmatpush1.bf16.msra.mxu1 %v3720_v16  ;;  %v3810_v15 = vld [vmem:[#allocation5 + $0x164] ss:$16 sps:$4 sm:$0xff]   ;;  %v3813_v16 = vld [vmem:[#allocation5 + $0x16c] ss:$16 sps:$4 sm:$0xff]  }
  0xee   :  { %1432 = vmatprep.subr.bf16.mxu0 %v3725_v17  ;;  %1596 = vmatprep.subr.bf16.mxu1 %v3728_v18  ;;  %v3808_v17 = vld [vmem:[#allocation5 + $0x160] ss:$16 sps:$4 sm:$0xff]   ;;  %v3811_v18 = vld [vmem:[#allocation5 + $0x168] ss:$16 sps:$4 sm:$0xff]  }
  0xf1   :  { %1433 = vmatpush1.bf16.msra.mxu0 %v3723_v19  ;;  %1597 = vmatpush1.bf16.msra.mxu1 %v3726_v20  ;;  %v3816_v19 = vld [vmem:[#allocation5 + $0x184] ss:$16 sps:$4 sm:$0xff]   ;;  %v3819_v20 = vld [vmem:[#allocation5 + $0x18c] ss:$16 sps:$4 sm:$0xff]  }
  0xf2   :  { %1434 = vmatprep.subr.bf16.mxu0 %v3731_v21  ;;  %1598 = vmatprep.subr.bf16.mxu1 %v3734_v22  ;;  %v3814_v21 = vld [vmem:[#allocation5 + $0x180] ss:$16 sps:$4 sm:$0xff]   ;;  %v3817_v22 = vld [vmem:[#allocation5 + $0x188] ss:$16 sps:$4 sm:$0xff]  }
  0xf5   :  { %1435 = vmatpush1.bf16.msra.mxu0 %v3729_v24  ;;  %1599 = vmatpush1.bf16.msra.mxu1 %v3732_v25  ;;  %v3822_v24 = vld [vmem:[#allocation5 + $0x1a4] ss:$16 sps:$4 sm:$0xff]   ;;  %v3825_v25 = vld [vmem:[#allocation5 + $0x1ac] ss:$16 sps:$4 sm:$0xff]  }
  0xf6   :  { %1445 = vmatprep.subr.bf16.mxu0 %v3738_v9  ;;  %1609 = vmatprep.subr.bf16.mxu1 %v3741_v27  ;;  %v3820_v9 = vld [vmem:[#allocation5 + $0x1a0] ss:$16 sps:$4 sm:$0xff]   ;;  %v3823_v27 = vld [vmem:[#allocation5 + $0x1a8] ss:$16 sps:$4 sm:$0xff]  }
  0xf8   :  { %1437 = vmatmul.mubr.bf16.vlgmr.msra.gmra.mrb[0].mxu0 %v117_v30  ;;  %1601 = vmatmul.mubr.bf16.vlgmr.msra.gmra.mrb[0].mxu1 %v117_v30  ;;  %v3826_v30 = vld [vmem:[#allocation5 + $0x1c0] ss:$16 sps:$4 sm:$0xff]  }
  0xf9   :  { %1446 = vmatpush1.bf16.msra.mxu0 %v3736_v28  ;;  %1610 = vmatpush1.bf16.msra.mxu1 %v3739_v29  ;;  %v3828_v28 = vld [vmem:[#allocation5 + $0x1c4] ss:$16 sps:$4 sm:$0xff]   ;;  %v3831_v29 = vld [vmem:[#allocation5 + $0x1cc] ss:$16 sps:$4 sm:$0xff]  }
  0xfa   :  { %1477 = vmatprep.mubr.bf16.mxu0 %v4072_v34  ;;  %1641 = vmatprep.mubr.bf16.mxu1 %v4072_v34  ;;  %v3832_v34 = vld [vmem:[#allocation5 + $0x1e0] ss:$16 sps:$4 sm:$0xff]  }
  0xfb   :  { %2448 = vmatprep.subr.bf16.mxu0 %v3744_v31  ;;  %2530 = vmatprep.subr.bf16.mxu1 %v3747_v32  ;;  %v3829_v31 = vld [vmem:[#allocation5 + $0x1c8] ss:$16 sps:$4 sm:$0xff]   ;;  %v3834_v32 = vld [vmem:[#allocation5 + $0x1e4] ss:$16 sps:$4 sm:$0xff]  }
 0x104   :  { %3189 = vmatmul.mubr.msk.bf16.vlgmr.msra.gmra.mrb[0].mxu0 %vm1318_vm0, %v119_v37  ;;  %3190 = vmatmul.mubr.msk.bf16.vlgmr.msra.gmra.mrb[0].mxu1 %vm1318_vm0, %v119_v37  ;;  %v320_v37 = vsub.s32 0, %v4157_v43 }
 0x105   :  { %2449 = vmatpush1.bf16.msra.mxu0 %v3742_v35  ;;  %2531 = vmatpush1.bf16.msra.mxu1 %v3745_v36  ;;  %v3840_v35 = vld [vmem:[#allocation5 + $0x204] ss:$16 sps:$4 sm:$0xff]   ;;  %v3843_v36 = vld [vmem:[#allocation5 + $0x20c] ss:$16 sps:$4 sm:$0xff]  }
 0x106   :  { %2450 = vmatprep.subr.bf16.mxu0 %v3750_v38  ;;  %2532 = vmatprep.subr.bf16.mxu1 %v3753_v39  ;;  %v4193_v38 = vld [vmem:[%s4241_s2] sm:$0xf]  ;;  %v324_v39 = vsub.s32 1, %v4157_v43 }
 0x109   :  { %2451 = vmatpush1.bf16.msra.mxu0 %v3748_v40  ;;  %2533 = vmatpush1.bf16.msra.mxu1 %v3751_v41  ;;  %v332_v40 = vsub.s32 3, %v4157_v43  ;;  %v321_v41 = vrot.slane %v4193_v38, %v320_v37 }
 0x10a   :  { %2452 = vmatprep.subr.bf16.mxu0 %v3756_v23  ;;  %2534 = vmatprep.subr.bf16.mxu1 %v3759_v42  ;;  %v325_v23 = vrot.slane %v4193_v38, %v324_v39 }
 0x10b   :  { %v333_v42 = vrot.slane %v4193_v38, %v332_v40 }
 0x10d   :  { %2453 = vmatpush1.bf16.msra.mxu0 %v3754_v44  ;;  %2535 = vmatpush1.bf16.msra.mxu1 %v3757_v45 }
 0x10e   :  { %2454 = vmatprep.subr.bf16.mxu0 %v3762_v46  ;;  %2536 = vmatprep.subr.bf16.mxu1 %v3765_v47 }
 0x111   :  { %2455 = vmatpush1.bf16.msra.mxu0 %v3760_v49  ;;  %2537 = vmatpush1.bf16.msra.mxu1 %v3763_v48 }
 0x112   :  { %2456 = vmatprep.subr.bf16.mxu0 %v3768_v50  ;;  %2538 = vmatprep.subr.bf16.mxu1 %v3771_v51 }
 0x115   :  { %2457 = vmatpush1.bf16.msra.mxu0 %v3766_v52  ;;  %2539 = vmatpush1.bf16.msra.mxu1 %v3769_v53 }
 0x116   :  { %2458 = vmatprep.subr.bf16.mxu0 %v3774_v54  ;;  %2540 = vmatprep.subr.bf16.mxu1 %v3777_v55 }
 0x119   :  { %2459 = vmatpush1.bf16.msra.mxu0 %v3772_v56  ;;  %2541 = vmatpush1.bf16.msra.mxu1 %v3775_v57 }
 0x11a   :  { %2460 = vmatprep.subr.bf16.mxu0 %v3780_v58  ;;  %2542 = vmatprep.subr.bf16.mxu1 %v3783_v59  ;;  %v3838_v59 = vld [vmem:[#allocation5 + $0x200] ss:$16 sps:$4 sm:$0xff]  }
 0x11d   :  { %2461 = vmatpush1.bf16.msra.mxu0 %v3778_v60  ;;  %2543 = vmatpush1.bf16.msra.mxu1 %v3781_v61  ;;  %v3841_v60 = vld [vmem:[#allocation5 + $0x208] ss:$16 sps:$4 sm:$0xff]  }
 0x11e   :  { %2462 = vmatprep.subr.bf16.mxu0 %v3786_v62  ;;  %2544 = vmatprep.subr.bf16.mxu1 %v3789_v63  ;;  %v3846_v62 = vld [vmem:[#allocation5 + $0x224] ss:$16 sps:$4 sm:$0xff]   ;;  %v3849_v63 = vld [vmem:[#allocation5 + $0x22c] ss:$16 sps:$4 sm:$0xff]  }
 0x121   :  { %2463 = vmatpush1.bf16.msra.mxu0 %v3784_v0  ;;  %2545 = vmatpush1.bf16.msra.mxu1 %v3787_v1  ;;  %v3844_v1 = vld [vmem:[#allocation5 + $0x220] ss:$16 sps:$4 sm:$0xff]  }
 0x122   :  { %2464 = vmatprep.subr.bf16.mxu0 %v3792_v2  ;;  %2546 = vmatprep.subr.bf16.mxu1 %v3795_v3  ;;  %v3847_v2 = vld [vmem:[#allocation5 + $0x228] ss:$16 sps:$4 sm:$0xff]   ;;  %v3852_v3 = vld [vmem:[#allocation5 + $0x244] ss:$16 sps:$4 sm:$0xff]  }
 0x125   :  { %2465 = vmatpush1.bf16.msra.mxu0 %v3790_v4  ;;  %2547 = vmatpush1.bf16.msra.mxu1 %v3793_v5  ;;  %v3855_v4 = vld [vmem:[#allocation5 + $0x24c] ss:$16 sps:$4 sm:$0xff]   ;;  %v3850_v5 = vld [vmem:[#allocation5 + $0x240] ss:$16 sps:$4 sm:$0xff]  }
 0x126   :  { %2466 = vmatprep.subr.bf16.mxu0 %v3798_v6  ;;  %2548 = vmatprep.subr.bf16.mxu1 %v3801_v7  ;;  %v3853_v6 = vld [vmem:[#allocation5 + $0x248] ss:$16 sps:$4 sm:$0xff]   ;;  %v3858_v7 = vld [vmem:[#allocation5 + $0x264] ss:$16 sps:$4 sm:$0xff]  }
 0x129   :  { %2467 = vmatpush1.bf16.msra.mxu0 %v3796_v8  ;;  %2549 = vmatpush1.bf16.msra.mxu1 %v3799_v10  ;;  %v3861_v8 = vld [vmem:[#allocation5 + $0x26c] ss:$16 sps:$4 sm:$0xff]   ;;  %v3856_v10 = vld [vmem:[#allocation5 + $0x260] ss:$16 sps:$4 sm:$0xff]  }
 0x12a   :  { %2468 = vmatprep.subr.bf16.mxu0 %v3804_v11  ;;  %2550 = vmatprep.subr.bf16.mxu1 %v3807_v12  ;;  %v3859_v11 = vld [vmem:[#allocation5 + $0x268] ss:$16 sps:$4 sm:$0xff]   ;;  %v3864_v12 = vld [vmem:[#allocation5 + $0x284] ss:$16 sps:$4 sm:$0xff]  }
 0x12d   :  { %2469 = vmatpush1.bf16.msra.mxu0 %v3802_v13  ;;  %2551 = vmatpush1.bf16.msra.mxu1 %v3805_v14  ;;  %v3867_v13 = vld [vmem:[#allocation5 + $0x28c] ss:$16 sps:$4 sm:$0xff]   ;;  %v3862_v14 = vld [vmem:[#allocation5 + $0x280] ss:$16 sps:$4 sm:$0xff]  }
 0x12e   :  { %2470 = vmatprep.subr.bf16.mxu0 %v3810_v15  ;;  %2552 = vmatprep.subr.bf16.mxu1 %v3813_v16  ;;  %v3865_v15 = vld [vmem:[#allocation5 + $0x288] ss:$16 sps:$4 sm:$0xff]   ;;  %v3870_v16 = vld [vmem:[#allocation5 + $0x2a4] ss:$16 sps:$4 sm:$0xff]  }
 0x131   :  { %2471 = vmatpush1.bf16.msra.mxu0 %v3808_v17  ;;  %2553 = vmatpush1.bf16.msra.mxu1 %v3811_v18  ;;  %v3873_v17 = vld [vmem:[#allocation5 + $0x2ac] ss:$16 sps:$4 sm:$0xff]   ;;  %v3868_v18 = vld [vmem:[#allocation5 + $0x2a0] ss:$16 sps:$4 sm:$0xff]  }
 0x132   :  { %2472 = vmatprep.subr.bf16.mxu0 %v3816_v19  ;;  %2554 = vmatprep.subr.bf16.mxu1 %v3819_v20  ;;  %v3871_v19 = vld [vmem:[#allocation5 + $0x2a8] ss:$16 sps:$4 sm:$0xff]   ;;  %v3876_v20 = vld [vmem:[#allocation5 + $0x2c4] ss:$16 sps:$4 sm:$0xff]  }
 0x135   :  { %2473 = vmatpush1.bf16.msra.mxu0 %v3814_v21  ;;  %2555 = vmatpush1.bf16.msra.mxu1 %v3817_v22  ;;  %v3879_v21 = vld [vmem:[#allocation5 + $0x2cc] ss:$16 sps:$4 sm:$0xff]   ;;  %v3874_v22 = vld [vmem:[#allocation5 + $0x2c0] ss:$16 sps:$4 sm:$0xff]  }
 0x136   :  { %2474 = vmatprep.subr.bf16.mxu0 %v3822_v24  ;;  %2556 = vmatprep.subr.bf16.mxu1 %v3825_v25  ;;  %v3877_v24 = vld [vmem:[#allocation5 + $0x2c8] ss:$16 sps:$4 sm:$0xff]   ;;  %v3882_v25 = vld [vmem:[#allocation5 + $0x2e4] ss:$16 sps:$4 sm:$0xff]  }
 0x139   :  { %2475 = vmatpush1.bf16.msra.mxu0 %v3820_v9  ;;  %2557 = vmatpush1.bf16.msra.mxu1 %v3823_v27  ;;  %v3885_v9 = vld [vmem:[#allocation5 + $0x2ec] ss:$16 sps:$4 sm:$0xff]   ;;  %v3880_v27 = vld [vmem:[#allocation5 + $0x2e0] ss:$16 sps:$4 sm:$0xff]  }
 0x13a   :  { %2476 = vmatprep.subr.bf16.mxu0 %v3828_v28  ;;  %2558 = vmatprep.subr.bf16.mxu1 %v3831_v29  ;;  %v3883_v28 = vld [vmem:[#allocation5 + $0x2e8] ss:$16 sps:$4 sm:$0xff]   ;;  %v3888_v29 = vld [vmem:[#allocation5 + $0x304] ss:$16 sps:$4 sm:$0xff]  }
 0x13d   :  { %2477 = vmatpush1.bf16.msra.mxu0 %v3826_v30  ;;  %2559 = vmatpush1.bf16.msra.mxu1 %v3829_v31  ;;  %v3891_v30 = vld [vmem:[#allocation5 + $0x30c] ss:$16 sps:$4 sm:$0xff]   ;;  %v3886_v31 = vld [vmem:[#allocation5 + $0x300] ss:$16 sps:$4 sm:$0xff]  }
 0x13e   :  { %2478 = vmatprep.subr.bf16.mxu0 %v3834_v32  ;;  %2560 = vmatprep.subr.bf16.mxu1 %v3837_v33  ;;  %v3889_v32 = vld [vmem:[#allocation5 + $0x308] ss:$16 sps:$4 sm:$0xff]   ;;  %v3894_v33 = vld [vmem:[#allocation5 + $0x324] ss:$16 sps:$4 sm:$0xff]  }
 0x141   :  { %2479 = vmatpush1.bf16.msra.mxu0 %v3832_v34  ;;  %2561 = vmatpush1.bf16.msra.mxu1 %v3835_v26  ;;  %v3897_v34 = vld [vmem:[#allocation5 + $0x32c] ss:$16 sps:$4 sm:$0xff]   ;;  %v3892_v26 = vld [vmem:[#allocation5 + $0x320] ss:$16 sps:$4 sm:$0xff]  }
 0x142   :  { %2489 = vmatprep.subr.bf16.mxu0 %v3840_v35  ;;  %2571 = vmatprep.subr.bf16.mxu1 %v3843_v36  ;;  %v3895_v35 = vld [vmem:[#allocation5 + $0x328] ss:$16 sps:$4 sm:$0xff]   ;;  %v3900_v36 = vld [vmem:[#allocation5 + $0x344] ss:$16 sps:$4 sm:$0xff]  }
 0x1d7   :  { %v1479_v44 = vpop.f32.mrb[0].mxu0  ;;  %v4206_v45 = vpop.f32.mrb[0].mxu1 }
 0x1d8   :  { %v3396_v46 = vadd.f32 %v1479_v44, %v321_v41  ;;  %v1481_v47 = vpop.f32.mrb[1].mxu0  ;;  %v1645_v49 = vpop.f32.mrb[1].mxu1  ;;  %v3903_v41 = vld [vmem:[#allocation5 + $0x34c] ss:$16 sps:$4 sm:$0xff]   ;;  %v3906_v44 = vld [vmem:[#allocation5 + $0x364] ss:$16 sps:$4 sm:$0xff]  }
 0x1d9   :  { %v3397_v48 = vadd.f32 %v1481_v47, %v325_v23  ;;  %v3399_v50 = vadd.f32 %v1645_v49, %v333_v42  ;;  %v1483_v51 = vpop.f32.mrb[2].mxu0  ;;  %v1647_v52 = vpop.f32.mrb[2].mxu1  ;;  %v3898_v23 = vld [vmem:[#allocation5 + $0x340] ss:$16 sps:$4 sm:$0xff]   ;;  %v3901_v42 = vld [vmem:[#allocation5 + $0x348] ss:$16 sps:$4 sm:$0xff]  }
 0x1da   :  { %v1650_v53 = vmax.f32 %v3396_v46, 0.0  ;;  %v1484_v54 = vpop.f32.mrb[3].mxu0  ;;  %v1648_v55 = vpop.f32.mrb[3].mxu1  ;;  %v3909_v46 = vld [vmem:[#allocation5 + $0x36c] ss:$16 sps:$4 sm:$0xff]  }
 0x1db   :  { %v1651_v56 = vmax.f32 %v3397_v48, 0.0  ;;  %v1653_v57 = vmax.f32 %v3399_v50, 0.0  ;;  %v3904_v47 = vld [vmem:[#allocation5 + $0x360] ss:$16 sps:$4 sm:$0xff]   ;;  %v3907_v49 = vld [vmem:[#allocation5 + $0x368] ss:$16 sps:$4 sm:$0xff]  }
 0x1dc   :  { %v1654_v61 = vpack.c.bf16 %v1650_v53, %v1650_v53  ;;  %v3912_v48 = vld [vmem:[#allocation5 + $0x384] ss:$16 sps:$4 sm:$0xff]   ;;  %v3915_v50 = vld [vmem:[#allocation5 + $0x38c] ss:$16 sps:$4 sm:$0xff]   ;;  %v3910_v51 = vld [vmem:[#allocation5 + $0x380] ss:$16 sps:$4 sm:$0xff]  }
 0x1dd   :  { %v1655_v58 = vpack.c.bf16 %v1651_v56, %v1651_v56  ;;  %v1657_v0 = vpack.c.bf16 %v1653_v57, %v1653_v57  ;;  %v3913_v52 = vld [vmem:[#allocation5 + $0x388] ss:$16 sps:$4 sm:$0xff]   ;;  %v328_v53 = vsub.s32 2, %v4157_v43  ;;  %v3918_v54 = vld [vmem:[#allocation5 + $0x3a4] ss:$16 sps:$4 sm:$0xff]  }
 0x1de   :  { %v3921_v55 = vld [vmem:[#allocation5 + $0x3ac] ss:$16 sps:$4 sm:$0xff]   ;;  %v3916_v56 = vld [vmem:[#allocation5 + $0x3a0] ss:$16 sps:$4 sm:$0xff]   ;;  %v3919_v57 = vld [vmem:[#allocation5 + $0x3a8] ss:$16 sps:$4 sm:$0xff]  }
 0x1df   :  { %2480 = vmatprep.mubr.bf16.mxu0 %v1655_v58  ;;  %2562 = vmatprep.mubr.bf16.mxu1 %v1655_v58  ;;  %v329_v58 = vrot.slane %v4193_v38, %v328_v53  ;;  %v3934_v38 = vld [vmem:[#allocation7 + $0x40] sm:$0xff]  }
 0x1e0   :  { %2481 = vmatmul.mubr.bf16.vlgmr.msra.gmra.mrb[4].mxu0 %v1654_v61  ;;  %2563 = vmatmul.mubr.bf16.vlgmr.msra.gmra.mrb[4].mxu1 %v1654_v61  ;;  %v3922_v61 = vld [vmem:[#allocation5 + $0x3c0] ss:$16 sps:$4 sm:$0xff]  }
 0x1e1   :  { %2490 = vmatpush1.bf16.msra.mxu0 %v3838_v59  ;;  %2572 = vmatpush1.bf16.msra.mxu1 %v3841_v60  ;;  %v3924_v59 = vld [vmem:[#allocation5 + $0x3c4] ss:$16 sps:$4 sm:$0xff]   ;;  %v3927_v60 = vld [vmem:[#allocation5 + $0x3cc] ss:$16 sps:$4 sm:$0xff]  }
 0x1e2   :  { %2521 = vmatprep.mubr.bf16.mxu0 %v1657_v0  ;;  %2603 = vmatprep.mubr.bf16.mxu1 %v1657_v0  ;;  %v3930_v0 = vld [vmem:[#allocation5 + $0x3e4] ss:$16 sps:$4 sm:$0xff]  }
 0x1e3   :  { %2491 = vmatprep.subr.bf16.mxu0 %v3846_v62  ;;  %2573 = vmatprep.subr.bf16.mxu1 %v3849_v63  ;;  %v3925_v62 = vld [vmem:[#allocation5 + $0x3c8] ss:$16 sps:$4 sm:$0xff]   ;;  %v3398_v63 = vadd.f32 %v4206_v45, %v329_v58 }
 0x1e4   :  { %v3938_v45 = vld [vmem:[#allocation7 + $0x48] sm:$0xff]  }
 0x1e5   :  { %2492 = vmatpush1.bf16.msra.mxu0 %v3844_v1  ;;  %2574 = vmatpush1.bf16.msra.mxu1 %v3847_v2  ;;  %v3933_v1 = vld [vmem:[#allocation5 + $0x3ec] ss:$16 sps:$4 sm:$0xff]   ;;  %v3928_v2 = vld [vmem:[#allocation5 + $0x3e0] ss:$16 sps:$4 sm:$0xff]  }
 0x1e6   :  { %2493 = vmatprep.subr.bf16.mxu0 %v3852_v3  ;;  %2575 = vmatprep.subr.bf16.mxu1 %v3855_v4  ;;  %v3931_v3 = vld [vmem:[#allocation5 + $0x3e8] ss:$16 sps:$4 sm:$0xff]   ;;  %v1652_v4 = vmax.f32 %v3398_v63, 0.0 }
 0x1e9   :  { %2494 = vmatpush1.bf16.msra.mxu0 %v3850_v5  ;;  %2576 = vmatpush1.bf16.msra.mxu1 %v3853_v6  ;;  %v3935_v5 = vld [vmem:[#allocation7 + $0xc0] sm:$0xff]  }
 0x1ea   :  { %2495 = vmatprep.subr.bf16.mxu0 %v3858_v7  ;;  %2577 = vmatprep.subr.bf16.mxu1 %v3861_v8  ;;  %v3936_v6 = vld [vmem:[#allocation7] sm:$0xff]   ;;  %v1656_v8 = vpack.c.bf16 %v1652_v4, %v1652_v4 }
 0x1eb   :  { %v3937_v7 = vld [vmem:[#allocation7 + $0x80] sm:$0xff]  }
 0x1ed   :  { %2496 = vmatpush1.bf16.msra.mxu0 %v3856_v10  ;;  %2578 = vmatpush1.bf16.msra.mxu1 %v3859_v11  ;;  %v3939_v10 = vld [vmem:[#allocation7 + $0xc8] sm:$0xff]  }
 0x1ee   :  { %2497 = vmatprep.subr.bf16.mxu0 %v3864_v12  ;;  %2579 = vmatprep.subr.bf16.mxu1 %v3867_v13  ;;  %v3940_v11 = vld [vmem:[#allocation7 + $0x8] sm:$0xff]   ;;  %v3942_v13 = vld [vmem:[#allocation7 + $0x50] sm:$0xff]  }
 0x1ef   :  { %v3941_v12 = vld [vmem:[#allocation7 + $0x88] sm:$0xff]  }
 0x1f1   :  { %2498 = vmatpush1.bf16.msra.mxu0 %v3862_v14  ;;  %2580 = vmatpush1.bf16.msra.mxu1 %v3865_v15  ;;  %v3943_v14 = vld [vmem:[#allocation7 + $0xd0] sm:$0xff]  }
 0x1f2   :  { %2499 = vmatprep.subr.bf16.mxu0 %v3870_v16  ;;  %2581 = vmatprep.subr.bf16.mxu1 %v3873_v17  ;;  %v3944_v15 = vld [vmem:[#allocation7 + $0x10] sm:$0xff]   ;;  %v3946_v17 = vld [vmem:[#allocation7 + $0x58] sm:$0xff]  }
 0x1f3   :  { %v3945_v16 = vld [vmem:[#allocation7 + $0x90] sm:$0xff]  }
 0x1f5   :  { %2500 = vmatpush1.bf16.msra.mxu0 %v3868_v18  ;;  %2582 = vmatpush1.bf16.msra.mxu1 %v3871_v19  ;;  %v3947_v18 = vld [vmem:[#allocation7 + $0xd8] sm:$0xff]  }
 0x1f6   :  { %2501 = vmatprep.subr.bf16.mxu0 %v3876_v20  ;;  %2583 = vmatprep.subr.bf16.mxu1 %v3879_v21  ;;  %v3948_v19 = vld [vmem:[#allocation7 + $0x18] sm:$0xff]   ;;  %v3950_v21 = vld [vmem:[#allocation7 + $0x60] sm:$0xff]  }
 0x1f7   :  { %v3949_v20 = vld [vmem:[#allocation7 + $0x98] sm:$0xff]  }
 0x1f9   :  { %2502 = vmatpush1.bf16.msra.mxu0 %v3874_v22  ;;  %2584 = vmatpush1.bf16.msra.mxu1 %v3877_v24  ;;  %v3951_v22 = vld [vmem:[#allocation7 + $0xe0] sm:$0xff]  }
 0x1fa   :  { %2503 = vmatprep.subr.bf16.mxu0 %v3882_v25  ;;  %2585 = vmatprep.subr.bf16.mxu1 %v3885_v9  ;;  %v3952_v24 = vld [vmem:[#allocation7 + $0x20] sm:$0xff]   ;;  %v3954_v9 = vld [vmem:[#allocation7 + $0x68] sm:$0xff]  }
 0x1fb   :  { %v3953_v25 = vld [vmem:[#allocation7 + $0xa0] sm:$0xff]  }
 0x1fd   :  { %2504 = vmatpush1.bf16.msra.mxu0 %v3880_v27  ;;  %2586 = vmatpush1.bf16.msra.mxu1 %v3883_v28  ;;  %v3955_v27 = vld [vmem:[#allocation7 + $0xe8] sm:$0xff]  }
 0x1fe   :  { %2505 = vmatprep.subr.bf16.mxu0 %v3888_v29  ;;  %2587 = vmatprep.subr.bf16.mxu1 %v3891_v30  ;;  %v3956_v28 = vld [vmem:[#allocation7 + $0x28] sm:$0xff]   ;;  %v3958_v30 = vld [vmem:[#allocation7 + $0x70] sm:$0xff]  }
 0x1ff   :  { %v3957_v29 = vld [vmem:[#allocation7 + $0xa8] sm:$0xff]  }
 0x201   :  { %2506 = vmatpush1.bf16.msra.mxu0 %v3886_v31  ;;  %2588 = vmatpush1.bf16.msra.mxu1 %v3889_v32  ;;  %v3959_v31 = vld [vmem:[#allocation7 + $0xf0] sm:$0xff]  }
 0x202   :  { %2507 = vmatprep.subr.bf16.mxu0 %v3894_v33  ;;  %2589 = vmatprep.subr.bf16.mxu1 %v3897_v34  ;;  %v3960_v32 = vld [vmem:[#allocation7 + $0x30] sm:$0xff]   ;;  %v3962_v34 = vld [vmem:[#allocation7 + $0x78] sm:$0xff]  }
 0x203   :  { %v3961_v33 = vld [vmem:[#allocation7 + $0xb0] sm:$0xff]  }
 0x205   :  { %2508 = vmatpush1.bf16.msra.mxu0 %v3892_v26  ;;  %2590 = vmatpush1.bf16.msra.mxu1 %v3895_v35  ;;  %v3963_v26 = vld [vmem:[#allocation7 + $0xf8] sm:$0xff]  }
 0x206   :  { %2509 = vmatprep.subr.bf16.mxu0 %v3900_v36  ;;  %2591 = vmatprep.subr.bf16.mxu1 %v3903_v41  ;;  %v3964_v35 = vld [vmem:[#allocation7 + $0x38] sm:$0xff]   ;;  %v1786_v41 = vld [vmem:[%s4243_s4] sm:$0xf] }
 0x207   :  { %v3965_v36 = vld [vmem:[#allocation7 + $0xb8] sm:$0xff]  }
 0x209   :  { %2510 = vmatpush1.bf16.msra.mxu0 %v3898_v23  ;;  %2592 = vmatpush1.bf16.msra.mxu1 %v3901_v42  ;;  %v1791_v23 = vrot.slane %v1786_v41, %v320_v37  ;;  %v1799_v42 = vrot.slane %v1786_v41, %v328_v53 }
 0x20a   :  { %2511 = vmatprep.subr.bf16.mxu0 %v3906_v44  ;;  %2593 = vmatprep.subr.bf16.mxu1 %v3909_v46  ;;  %v1795_v44 = vrot.slane %v1786_v41, %v324_v39  ;;  %v1803_v46 = vrot.slane %v1786_v41, %v332_v40 }
 0x20d   :  { %2512 = vmatpush1.bf16.msra.mxu0 %v3904_v47  ;;  %2594 = vmatpush1.bf16.msra.mxu1 %v3907_v49 }
 0x20e   :  { %2513 = vmatprep.subr.bf16.mxu0 %v3912_v48  ;;  %2595 = vmatprep.subr.bf16.mxu1 %v3915_v50 }
 0x211   :  { %2514 = vmatpush1.bf16.msra.mxu0 %v3910_v51  ;;  %2596 = vmatpush1.bf16.msra.mxu1 %v3913_v52 }
 0x212   :  { %2515 = vmatprep.subr.bf16.mxu0 %v3918_v54  ;;  %2597 = vmatprep.subr.bf16.mxu1 %v3921_v55 }
 0x215   :  { %2516 = vmatpush1.bf16.msra.mxu0 %v3916_v56  ;;  %2598 = vmatpush1.bf16.msra.mxu1 %v3919_v57 }
 0x216   :  { %2517 = vmatprep.subr.bf16.mxu0 %v3924_v59  ;;  %2599 = vmatprep.subr.bf16.mxu1 %v3927_v60 }
 0x219   :  { %2518 = vmatpush1.bf16.msra.mxu0 %v3922_v61  ;;  %2600 = vmatpush1.bf16.msra.mxu1 %v3925_v62 }
 0x21a   :  { %2519 = vmatprep.subr.bf16.mxu0 %v3930_v0  ;;  %2601 = vmatprep.subr.bf16.mxu1 %v3933_v1  ;;  %v3319_v1 = vld [vmem:[%s4245_s6] ss:$0 sm:$0xff]  ;;  %s4073_s6 = smov [#allocation8]  }
 0x21b   :  { %s2983_s22 = sshll.u32 %s4073_s6, 4  ;;  %s2984_s22 = int_to_ptr.vmem [resolvable:$true] %s2983_s22 }
 0x21c   :  { %s4036_s23 = scalar_lea.vmem %s2984_s22, 32  ;;  %p4041_p11 = scmp.lt.s32.totalorder %s2984_s22, %s2984_s22 }
 0x21d   :  { %2520 = vmatpush1.bf16.msra.mxu0 %v3928_v2  ;;  %2602 = vmatpush1.bf16.msra.mxu1 %v3931_v3  ;;  %p4037_p10 = scmp.ne.s32.totalorder %s2984_s22, %s4036_s23  ;;  %p4042_p12 = scmp.lt.s32.totalorder %s4036_s23, %s4036_s23 }
 0x21e   :  { %3352 = vmatprep.subr.bf16.mxu0 %v3934_v38  ;;  %3374 = vmatprep.subr.bf16.mxu1 %v3935_v5 }
 0x21f   :  { %p4043_p13 = por %p4042_p12, %p4041_p11 }
 0x220   :  { %2522 = vmatmul.mubr.bf16.vlgmr.msra.gmra.mrb[4].mxu0 %v1656_v8  ;;  %2604 = vmatmul.mubr.bf16.vlgmr.msra.gmra.mrb[4].mxu1 %v1656_v8 }
 0x221   :  { %3353 = vmatpush3.bf16.msra.mxu0 %v3936_v6  ;;  %3375 = vmatpush3.bf16.msra.mxu1 %v3937_v7  ;;  %p4044_p0 = pnand %p4043_p13, %p4037_p10 }
 0x222   :  { %3354 = vmatprep.subr.bf16.mxu0 %v3938_v45  ;;  %3376 = vmatprep.subr.bf16.mxu1 %v3939_v10 }
 0x225   :  { %3355 = vmatpush3.bf16.msra.mxu0 %v3940_v11  ;;  %3377 = vmatpush3.bf16.msra.mxu1 %v3941_v12 }
 0x226   :  { %3356 = vmatprep.subr.bf16.mxu0 %v3942_v13  ;;  %3378 = vmatprep.subr.bf16.mxu1 %v3943_v14 }
 0x229   :  { %3357 = vmatpush3.bf16.msra.mxu0 %v3944_v15  ;;  %3379 = vmatpush3.bf16.msra.mxu1 %v3945_v16 }
 0x22a   :  { %3358 = vmatprep.subr.bf16.mxu0 %v3946_v17  ;;  %3380 = vmatprep.subr.bf16.mxu1 %v3947_v18 }
 0x22d   :  { %3359 = vmatpush3.bf16.msra.mxu0 %v3948_v19  ;;  %3381 = vmatpush3.bf16.msra.mxu1 %v3949_v20 }
 0x22e   :  { %3360 = vmatprep.subr.bf16.mxu0 %v3950_v21  ;;  %3382 = vmatprep.subr.bf16.mxu1 %v3951_v22 }
 0x231   :  { %3361 = vmatpush3.bf16.msra.mxu0 %v3952_v24  ;;  %3383 = vmatpush3.bf16.msra.mxu1 %v3953_v25 }
 0x232   :  { %3362 = vmatprep.subr.bf16.mxu0 %v3954_v9  ;;  %3384 = vmatprep.subr.bf16.mxu1 %v3955_v27 }
 0x235   :  { %3363 = vmatpush3.bf16.msra.mxu0 %v3956_v28  ;;  %3385 = vmatpush3.bf16.msra.mxu1 %v3957_v29 }
 0x236   :  { %3364 = vmatprep.subr.bf16.mxu0 %v3958_v30  ;;  %3386 = vmatprep.subr.bf16.mxu1 %v3959_v31 }
 0x239   :  { %3365 = vmatpush3.bf16.msra.mxu0 %v3960_v32  ;;  %3387 = vmatpush3.bf16.msra.mxu1 %v3961_v33 }
 0x23a   :  { %3366 = vmatprep.subr.bf16.mxu0 %v3962_v34  ;;  %3388 = vmatprep.subr.bf16.mxu1 %v3963_v26 }
 0x23d   :  { %3367 = vmatpush3.bf16.msra.mxu0 %v3964_v35  ;;  %3389 = vmatpush3.bf16.msra.mxu1 %v3965_v36 }
 0x2f3   :  { %v2523_v47 = vpop.f32.mrb[4].mxu0  ;;  %v2605_v49 = vpop.f32.mrb[4].mxu1 }
 0x2f4   :  { %v3400_v48 = vadd.f32 %v2523_v47, %v1791_v23  ;;  %v3402_v50 = vadd.f32 %v2605_v49, %v1799_v42  ;;  %v2525_v51 = vpop.f32.mrb[5].mxu0  ;;  %v2607_v52 = vpop.f32.mrb[5].mxu1 }
 0x2f5   :  { %v3401_v54 = vadd.f32 %v2525_v51, %v1795_v44  ;;  %v3403_v55 = vadd.f32 %v2607_v52, %v1803_v46  ;;  %v2527_v56 = vpop.f32.mrb[6].mxu0  ;;  %v2609_v57 = vpop.f32.mrb[6].mxu1 }
 0x2f6   :  { %v2612_v37 = vmax.f32 %v3400_v48, 0.0  ;;  %v2614_v58 = vmax.f32 %v3402_v50, 0.0  ;;  %v2528_v59 = vpop.f32.mrb[7].mxu0  ;;  %v2610_v53 = vpop.f32.mrb[7].mxu1 }
 0x2f7   :  { %v2613_v60 = vmax.f32 %v3401_v54, 0.0  ;;  %v2615_v61 = vmax.f32 %v3403_v55, 0.0 }
 0x2f8   :  { %v2616_v43 = vpack.c.bf16 %v2612_v37, %v2612_v37  ;;  %v2618_v40 = vpack.c.bf16 %v2614_v58, %v2614_v58 }
 0x2f9   :  { %v2617_v39 = vpack.c.bf16 %v2613_v60, %v2613_v60  ;;  %v2619_v62 = vpack.c.bf16 %v2615_v61, %v2615_v61 }
 0x2fb   :  { %2915 = vmatprep.mubr.bf16.mxu0 %v2617_v39  ;;  %2955 = vmatprep.mubr.bf16.mxu1 %v2619_v62 }
 0x2fc   :  { %2916 = vmatmul.mubr.bf16.vlgmr.msra.gmra.mrb[8].mxu0 %v2616_v43  ;;  %2956 = vmatmul.mubr.bf16.vlgmr.msra.gmra.mrb[8].mxu1 %v2618_v40 }
 0x3cf   :  { %v3368_v63 = vpop.f32.mrb[8].mxu0  ;;  %v3390_v0 = vpop.f32.mrb[8].mxu1 }
 0x3d0   :  { %v3369_v2 = vpop.f32.mrb[9].mxu0  ;;  %v3391_v3 = vpop.f32.mrb[9].mxu1 }
 0x3d1   :  { %v3370_v4 = vadd.f32 %v3369_v2, %v3368_v63  ;;  %v3392_v38 = vadd.f32 %v3391_v3, %v3390_v0  ;;  %v3371_v5 = vpop.f32.mrb[10].mxu0  ;;  %v3393_v6 = vpop.f32.mrb[10].mxu1 }
 0x3d2   :  { %v3372_v7 = vpop.f32.mrb[11].mxu0  ;;  %v3394_v8 = vpop.f32.mrb[11].mxu1 }
 0x3d3   :  { %v2918_v45 = vadd.f32 %v3370_v4, %v3319_v1 }
 0x3d5   :  { %v2958_v10 = vadd.f32 %v3392_v38, %v2918_v45 }
 0x3d7   :  { %v2964_v11 = vsel %vm2963_vm1, %v2958_v10, -inf }
 0x3d8   :  { %2965 = vmax.xlane.f32.xlu0 %v2964_v11 }
 0x465   :  { %v2966_v12 = vpop.xlane.xlu0 %2965 }
 0x466   :  { %v2967_v13 = vsub.f32 %v2958_v10, %v2966_v12 }
 0x468   :  { %v2968_v14 = vmul.f32 1.442695, %v2967_v13 }
 0x46a   :  { %3966 = vpow2.f32 %v2968_v14 }
 0x474   :  { %v3967_v15 = vpop.eup %3966 }
 0x475   :  { %v2970_v16 = vsel %vm2963_vm1, %v3967_v15, 0.0 }
 0x476   :  { %2971 = vadd.xlane.f32.xlu0 %v2970_v16 }
 0x503   :  { %v2972_v17 = vpop.xlane.xlu0 %2971 }
 0x504   :  { %3968 = vlog2.f32 %v2972_v17 }
 0x50e   :  { %v3969_v18 = vpop.eup %3968 }
 0x50f   :  { %v2974_v19 = vmul.f32 0.6931472, %v3969_v18 }
 0x511   :  { %v2975_v20 = vsub.f32 %v2967_v13, %v2974_v19 }
 0x513   :  { %2976 = vst [vmem:[#allocation8] sm:$0x3] %v2975_v20 }
 0x514   :  { %4047 = shalt.err (!%p4044_p0)
}
 0x515   :  { %s4048_s25 = scalar_lea.hbm %s4246_s7, 32 }
 0x516   :  { %p4049_p1 = scmp.ne.s32.totalorder %s4246_s7, %s4048_s25  ;;  %p4052_p2 = scmp.lt.u32.totalorder %s4048_s25, %s4246_s7 }
 0x518   :  { %p4054_p3 = pnand %p4052_p2, %p4049_p1 }
 0x51a   :  { %4057 = shalt.err (!%p4054_p3)
}
 0x51b   :  { %2986 = dma.vmem_to_hbm [thread:$0]  %s2984_s22, 32, %s4246_s7, [#allocation4]  }
 0x51c   :  { %4062 = dma.done.wait [#allocation4], 32  }
 0x51d   :  { %4063 = vsyncadd [#allocation4], 4294967264 }
 0x51e   :  { %2990 = vsyncpa [#allocation3], 1 }
 0x51f   :  { %2991 = vsyncpa [#allocation6], 1 }
 0x520   :  { %2992 = vsyncpa [#allocation4], 1 }

</bundles_post_ra>
